<compile_context>
chip_gen: v5e
topology: v5e:2x2
jax: 0.10.0
libtpu: 0.0.40
codegen_flags: <defaults>
</compile_context>

<pallas_src>
import functools

import numpy as np
import jax
import jax.numpy as jnp
from jax.experimental import pallas as pl
from jax.experimental.pallas import tpu as pltpu

_EPS_BN = 1e-5
_EPS_LN = 1e-5
_LANES = 128


def _round_up(x: int, m: int) -> int:
    return (x + m - 1) // m * m


def _bilinear_up2_matrix(n_in: int) -> np.ndarray:
    """(2*n_in, n_in) matrix reproducing F.interpolate(scale_factor=2, mode='bilinear',
    align_corners=False) along one axis (PyTorch half-pixel + clamp).  Reference only."""
    n_out = 2 * n_in
    scale = n_in / n_out
    A = np.zeros((n_out, n_in), np.float32)
    for o in range(n_out):
        src = max((o + 0.5) * scale - 0.5, 0.0)
        i0 = min(int(np.floor(src)), n_in - 1)
        i1 = min(i0 + 1, n_in - 1)
        w1 = src - i0
        A[o, i0] += 1.0 - w1
        A[o, i1] += w1
    return A


def _dtok_kernel(patches_ref, x2_ref, w_ref, bn_scale_ref, bn_bias_ref,
                 ln_g_ref, ln_b_ref, out_ref, *, cout_real, row_tile, w_in):
    """One (batch, row-band) step: conv3x3+BN -> 2x bilinear up (2-tap VPU) -> ReLU
    -> +x2 -> LayerNorm, producing a (2*TH, 2[w-parity], W, C_pad) output band."""
    th = row_tile
    th_h = th + 2                      # band rows incl. 1-row upsample halo on each side
    c_pad = out_ref.shape[-1]
    m = th_h * w_in

    # ---- 3x3 conv (pad=1) as ONE fused bf16 matmul (f32 acc), BatchNorm folded in ----
    y = jnp.dot(patches_ref[...], w_ref[...],
                preferred_element_type=jnp.float32)            # (th_h*W, C_pad)
    y = y * bn_scale_ref[...] + bn_bias_ref[...]

    # ---- width x2 bilinear upsample: 2-tap VPU blend (no MXU) ----
    # Neighbours via a sublane roll on the 2D conv output; the wrapped values at
    # columns 0 / W-1 are exactly the positions replaced by the edge clamp below.
    col = jax.lax.broadcasted_iota(jnp.int32, (m, 1), 0) % w_in
    y_prev = jnp.where(col == 0, y, pltpu.roll(y, 1, axis=0))
    y_next = jnp.where(col == w_in - 1, y, pltpu.roll(y, m - 1, axis=0))
    even_w = (0.25 * y_prev + 0.75 * y).reshape(th_h, w_in, c_pad)   # output cols 2j
    odd_w = (0.75 * y + 0.25 * y_next).reshape(th_h, w_in, c_pad)    # output cols 2j+1
    uw = jnp.stack([even_w, odd_w], axis=1)                    # (th_h, 2[w-par], W, C)

    # ---- height x2 upsample: 2-tap blend using the 1-row halo (leading-dim slices) ----
    prev = uw[0:th]
    core = uw[1:th + 1]
    nxt = uw[2:th + 2]
    even_h = 0.25 * prev + 0.75 * core                         # output rows 2i
    odd_h = 0.75 * core + 0.25 * nxt                           # output rows 2i+1
    up = jnp.stack([even_h, odd_h], axis=1).reshape(2 * th, 2, w_in, c_pad)

    # ---- per-band epilogue: ReLU + residual add + LayerNorm over real channels ----
    z = jnp.maximum(up, 0.0) + x2_ref[...].astype(jnp.float32)
    inv_c = 1.0 / cout_real
    mu = jnp.sum(z, axis=-1, keepdims=True) * inv_c            # padded lanes are 0
    lane = jax.lax.broadcasted_iota(jnp.int32, (1, 1, 1, c_pad), 3)
    mask = (lane < cout_real).astype(jnp.float32)
    zc = (z - mu) * mask
    var = jnp.sum(zc * zc, axis=-1, keepdims=True) * inv_c
    out = zc * jax.lax.rsqrt(var + _EPS_LN) * ln_g_ref[...] + ln_b_ref[...]
    out_ref[...] = out.astype(out_ref.dtype)


def dtok_mlp_forward(x1, x2, params, row_tile=None):
    """x1: (B, Cin, H, W) NCHW;  x2: (B, Cout, 2H, 2W) NCHW.  Returns (B, Cout, 2H, 2W)."""
    B, Cin, H, W = x1.shape
    Cout = params["conv_w"].shape[0]
    Ho, Wo = 2 * H, 2 * W

    C_pad = _round_up(max(Cout, _LANES), _LANES)
    K = 9 * Cin
    K_pad = _round_up(max(K, _LANES), _LANES)

    if row_tile is None:
        divs = [t for t in range(1, H + 1) if H % t == 0]
        # smallest band with a decently filled conv matmul (M = TH*W >= 512) keeps the
        # per-band VMEM footprint small on every generation.
        row_tile = next((t for t in divs if t * W >= 512), divs[-1])
    TH = row_tile
    assert H % TH == 0, "row_tile must divide H"
    KH = H // TH

    # ---- glue: im2col patch stream, packed per row band with a 1-row upsample halo ----
    # TODO(synk): build the 9 taps in-kernel from a (TH+4, W+2, Cin) halo tile instead.
    x1_nhwc = jnp.transpose(x1, (0, 2, 3, 1))
    x1p = jnp.pad(x1_nhwc, ((0, 0), (1, 1), (1, 1), (0, 0)))
    patches = jnp.concatenate(
        [x1p[:, dy:dy + H, dx:dx + W, :] for dy in range(3) for dx in range(3)],
        axis=-1)                                                     # (B, H, W, 9*Cin)
    # replicated edge rows give exactly PyTorch's clamp-at-border bilinear behaviour
    patches_h = jnp.concatenate([patches[:, :1], patches, patches[:, -1:]], axis=1)
    bands = jnp.stack(
        [patches_h[:, k * TH: k * TH + TH + 2] for k in range(KH)], axis=1)
    bands = bands.reshape(B, KH, (TH + 2) * W, K)
    bands = jnp.pad(bands, ((0, 0), (0, 0), (0, 0), (0, K_pad - K))).astype(jnp.bfloat16)

    w_pack = jnp.transpose(params["conv_w"], (2, 3, 1, 0)).reshape(K, Cout)
    w_pack = jnp.pad(w_pack, ((0, K_pad - K), (0, C_pad - Cout))).astype(jnp.bfloat16)

    def pad_c(v):
        return jnp.pad(v.astype(jnp.float32), (0, C_pad - Cout)).reshape(1, C_pad)

    bn_scale = params["bn_gamma"] / jnp.sqrt(params["bn_var"] + _EPS_BN)
    bn_bias = (params["conv_b"] - params["bn_mean"]) * bn_scale + params["bn_beta"]
    bn_scale_p, bn_bias_p = pad_c(bn_scale), pad_c(bn_bias)
    ln_g, ln_b = pad_c(params["ln_gamma"]), pad_c(params["ln_beta"])

    # residual, width-parity-split layout (B, Ho, 2, W, C_pad), stored bf16 in HBM
    x2_split = jnp.transpose(x2.reshape(B, Cout, Ho, W, 2), (0, 2, 4, 3, 1))
    x2_split = jnp.pad(x2_split, ((0, 0), (0, 0), (0, 0), (0, 0), (0, C_pad - Cout)))
    x2_split = x2_split.astype(jnp.bfloat16)

    kernel = functools.partial(_dtok_kernel, cout_real=Cout, row_tile=TH, w_in=W)

    # per-band resident-set estimate -> explicit VMEM budget (v7x-safe cap)
    band_elems = 2 * TH * 2 * W * C_pad
    est = (2 * (TH + 2) * W * K_pad * 2          # patches block (bf16, double-buffered)
           + 2 * 2 * band_elems * 2              # x2 + out blocks (bf16, double-buffered)
           + 2 * K_pad * C_pad * 2               # packed weights (bf16)
           + 8 * band_elems * 4)                 # f32 in-kernel temporaries headroom
    vmem_limit = int(min(96 * 1024 * 1024, max(32 * 1024 * 1024, 2 * est)))

    out = pl.pallas_call(
        kernel,
        out_shape=jax.ShapeDtypeStruct((B, Ho, 2, W, C_pad), jnp.bfloat16),
        grid=(B, KH),
        in_specs=[
            pl.BlockSpec((None, None, (TH + 2) * W, K_pad),
                         lambda b, k: (b, k, 0, 0)),                  # patch band (+halo)
            pl.BlockSpec((None, 2 * TH, 2, W, C_pad),
                         lambda b, k: (b, k, 0, 0, 0)),               # residual band
            pl.BlockSpec((K_pad, C_pad), lambda b, k: (0, 0)),        # packed conv w
            pl.BlockSpec((1, C_pad), lambda b, k: (0, 0)),            # bn scale
            pl.BlockSpec((1, C_pad), lambda b, k: (0, 0)),            # bn bias
            pl.BlockSpec((1, C_pad), lambda b, k: (0, 0)),            # ln gamma
            pl.BlockSpec((1, C_pad), lambda b, k: (0, 0)),            # ln beta
        ],
        out_specs=pl.BlockSpec((None, 2 * TH, 2, W, C_pad),
                               lambda b, k: (b, k, 0, 0, 0)),
        compiler_params=pltpu.CompilerParams(
            dimension_semantics=("parallel", "parallel"),
            vmem_limit_bytes=vmem_limit),
    )(bands, x2_split, w_pack, bn_scale_p, bn_bias_p, ln_g, ln_b)

    # un-split the width parity + convert to NCHW in the single wrapper transpose that
    # NCHW output requires anyway.
    out = out[..., :Cout].astype(jnp.float32)                        # (B, Ho, 2, W, Cout)
    out = jnp.transpose(out, (0, 4, 1, 3, 2)).reshape(B, Cout, Ho, Wo)

    # TODO(synk): `self.block` (token-MLP sub-blocks) is a constructor argument whose class
    # is not provided; instantiated here as an empty sequence, so the block loop is a no-op.
    return out


def reference_forward(x1, x2, params):
    """Pure-JAX (non-Pallas, f32) reference of the same forward pass for validation."""
    y = jax.lax.conv_general_dilated(
        x1, params["conv_w"], window_strides=(1, 1), padding=((1, 1), (1, 1)),
        dimension_numbers=("NCHW", "OIHW", "NCHW"))
    y = y + params["conv_b"][None, :, None, None]
    scale = params["bn_gamma"] / jnp.sqrt(params["bn_var"] + _EPS_BN)
    y = (y - params["bn_mean"][None, :, None, None]) * scale[None, :, None, None] \
        + params["bn_beta"][None, :, None, None]
    B, C, H, W = y.shape
    M = jnp.asarray(np.kron(_bilinear_up2_matrix(H), _bilinear_up2_matrix(W)))
    up = jnp.einsum("oi,bci->bco", M, y.reshape(B, C, H * W)).reshape(B, C, 2 * H, 2 * W)
    z = jnp.maximum(up, 0.0) + x2
    t = jnp.transpose(z, (0, 2, 3, 1))
    mu = t.mean(-1, keepdims=True)
    var = ((t - mu) ** 2).mean(-1, keepdims=True)
    t = (t - mu) / jnp.sqrt(var + _EPS_LN) * params["ln_gamma"] + params["ln_beta"]
    return jnp.transpose(t, (0, 3, 1, 2))


if __name__ == "__main__":
    def run_case(key, B, Cin, Cout, H, W, row_tile=None):
        k1, k2, k3 = jax.random.split(key, 3)
        x1 = jax.random.normal(k1, (B, Cin, H, W), jnp.float32)
        x2 = jax.random.normal(k2, (B, Cout, 2 * H, 2 * W), jnp.float32)
        params = {
            "conv_w": 0.2 * jax.random.normal(k3, (Cout, Cin, 3, 3), jnp.float32),
            "conv_b": 0.1 * jnp.arange(Cout, dtype=jnp.float32),
            "bn_gamma": 1.0 + 0.05 * jnp.arange(Cout, dtype=jnp.float32),
            "bn_beta": 0.02 * jnp.arange(Cout, dtype=jnp.float32),
            "bn_mean": 0.01 * jnp.arange(Cout, dtype=jnp.float32),
            "bn_var": 1.0 + 0.1 * jnp.arange(Cout, dtype=jnp.float32),
            "ln_gamma": 1.0 - 0.03 * jnp.arange(Cout, dtype=jnp.float32),
            "ln_beta": 0.01 * jnp.arange(Cout, dtype=jnp.float32),
        }
        out = dtok_mlp_forward(x1, x2, params, row_tile=row_tile)
        jax.block_until_ready(out)
        ref = reference_forward(x1, x2, params)
        assert out.shape == (B, Cout, 2 * H, 2 * W)
        # Conv operands plus the residual/output HBM storage are bf16 (all in-kernel
        # math is f32), so compare against the pure-f32 reference with a
        # bf16-appropriate absolute tolerance.
        if not np.allclose(np.asarray(out), np.asarray(ref), rtol=0.0, atol=6e-2):
            raise AssertionError(
                f"Pallas output mismatch vs reference (max abs diff "
                f"{np.max(np.abs(np.asarray(out) - np.asarray(ref))):.4e})")

    key = jax.random.PRNGKey(0)
    ka, kb = jax.random.split(key)
    run_case(ka, B=2, Cin=4, Cout=8, H=8, W=8)                 # single row band per image
    run_case(kb, B=1, Cin=4, Cout=8, H=16, W=16, row_tile=8)   # 2 bands: exercises halos
    print("KERNEL_OK")
</pallas_src>

<mosaic_0001>
module attributes {stable_mosaic.version = 11 : i64} {
  func.func @_dtok_kernel(%arg0: i32, %arg1: i32, %arg2: memref<1x1x80x128xbf16, #tpu.memory_space<vmem>>, %arg3: memref<1x16x2x8x128xbf16, #tpu.memory_space<vmem>>, %arg4: memref<128x128xbf16, #tpu.memory_space<vmem>>, %arg5: memref<1x128xf32, #tpu.memory_space<vmem>>, %arg6: memref<1x128xf32, #tpu.memory_space<vmem>>, %arg7: memref<1x128xf32, #tpu.memory_space<vmem>>, %arg8: memref<1x128xf32, #tpu.memory_space<vmem>>, %arg9: memref<1x16x2x8x128xbf16, #tpu.memory_space<vmem>>) attributes {dimension_semantics = [#tpu.dimension_semantics<parallel>, #tpu.dimension_semantics<parallel>], iteration_bounds = array<i64: 2, 1>, scalar_prefetch = 0 : i64, scratch_operands = 0 : i64, tpu.core_type = #tpu.core_type<tc>, window_params = [{transform_indices = @transform_0, window_bounds = array<i64: 1, 1, 80, 128>}, {transform_indices = @transform_1, window_bounds = array<i64: 1, 16, 2, 8, 128>}, {pipeline_mode = #tpu.pipeline_mode<synchronous>, transform_indices = @transform_2, window_bounds = array<i64: 128, 128>}, {pipeline_mode = #tpu.pipeline_mode<synchronous>, transform_indices = @transform_3, window_bounds = array<i64: 1, 128>}, {pipeline_mode = #tpu.pipeline_mode<synchronous>, transform_indices = @transform_4, window_bounds = array<i64: 1, 128>}, {pipeline_mode = #tpu.pipeline_mode<synchronous>, transform_indices = @transform_5, window_bounds = array<i64: 1, 128>}, {pipeline_mode = #tpu.pipeline_mode<synchronous>, transform_indices = @transform_6, window_bounds = array<i64: 1, 128>}, {transform_indices = @transform_7, window_bounds = array<i64: 1, 16, 2, 8, 128>}]} {
    %c0 = arith.constant 0 : index
    %c0_0 = arith.constant 0 : index
    %c0_1 = arith.constant 0 : index
    %c0_2 = arith.constant 0 : index
    %0 = vector.load %arg2[%c0, %c0_0, %c0_1, %c0_2] : memref<1x1x80x128xbf16, #tpu.memory_space<vmem>>, vector<1x1x80x128xbf16>
    %1 = vector.shape_cast %0 : vector<1x1x80x128xbf16> to vector<80x128xbf16>
    %c0_3 = arith.constant 0 : index
    %c0_4 = arith.constant 0 : index
    %2 = vector.load %arg4[%c0_3, %c0_4] : memref<128x128xbf16, #tpu.memory_space<vmem>>, vector<128x128xbf16>
    %cst = arith.constant dense<0.000000e+00> : vector<80x128xf32>
    %3 = tpu.matmul %1, %2, %cst {dimension_numbers = #tpu.dot_dimension_numbers<[1], [0], [0], [1], [0, 0, 1, 1], [], []>} : vector<80x128xbf16>, vector<128x128xbf16>, vector<80x128xf32> -> vector<80x128xf32>
    %c0_5 = arith.constant 0 : index
    %c0_6 = arith.constant 0 : index
    %4 = vector.load %arg5[%c0_5, %c0_6] : memref<1x128xf32, #tpu.memory_space<vmem>>, vector<1x128xf32>
    %5 = vector.broadcast %4 : vector<1x128xf32> to vector<80x128xf32>
    %6 = arith.mulf %3, %5 : vector<80x128xf32>
    %c0_7 = arith.constant 0 : index
    %c0_8 = arith.constant 0 : index
    %7 = vector.load %arg6[%c0_7, %c0_8] : memref<1x128xf32, #tpu.memory_space<vmem>>, vector<1x128xf32>
    %8 = vector.broadcast %7 : vector<1x128xf32> to vector<80x128xf32>
    %9 = arith.addf %6, %8 : vector<80x128xf32>
    %10 = tpu.iota {dimensions = array<i32: 0>} : vector<80x1xi32>
    %c8_i32 = arith.constant 8 : i32
    %c0_i32 = arith.constant 0 : i32
    %11 = arith.cmpi eq, %c8_i32, %c0_i32 : i32
    %c1_i32 = arith.constant 1 : i32
    %12 = arith.select %11, %c1_i32, %c8_i32 : i32
    %13 = vector.broadcast %12 : i32 to vector<80x1xi32>
    %14 = arith.remsi %10, %13 : vector<80x1xi32>
    %c0_i32_9 = arith.constant 0 : i32
    %15 = vector.broadcast %c0_i32_9 : i32 to vector<80x1xi32>
    %16 = arith.cmpi ne, %14, %15 : vector<80x1xi32>
    %c0_i32_10 = arith.constant 0 : i32
    %17 = vector.broadcast %c0_i32_10 : i32 to vector<80x1xi32>
    %18 = arith.cmpi slt, %14, %17 : vector<80x1xi32>
    %c0_i32_11 = arith.constant 0 : i32
    %19 = arith.cmpi slt, %12, %c0_i32_11 : i32
    %20 = vector.broadcast %19 : i1 to vector<80x1xi1>
    %21 = vector.broadcast %20 : vector<80x1xi1> to vector<80x1xi1>
    %22 = arith.xori %18, %21 : vector<80x1xi1>
    %23 = arith.andi %22, %16 : vector<80x1xi1>
    %24 = vector.broadcast %12 : i32 to vector<80x1xi32>
    %25 = arith.addi %14, %24 : vector<80x1xi32>
    %26 = arith.select %23, %25, %14 : vector<80x1xi1>, vector<80x1xi32>
    %c0_i32_12 = arith.constant 0 : i32
    %27 = vector.broadcast %c0_i32_12 : i32 to vector<80x1xi32>
    %28 = arith.cmpi eq, %26, %27 : vector<80x1xi32>
    %c1_i32_13 = arith.constant 1 : i32
    %29 = tpu.dynamic_rotate %9 by %c1_i32_13 dim 0 : vector<80x128xf32>, i32 -> vector<80x128xf32>
    %30 = vector.shape_cast %28 : vector<80x1xi1> to vector<80x1xi1>
    %31 = vector.broadcast %30 : vector<80x1xi1> to vector<80x128xi1>
    %32 = arith.select %31, %9, %29 : vector<80x128xi1>, vector<80x128xf32>
    %c7_i32 = arith.constant 7 : i32
    %33 = vector.broadcast %c7_i32 : i32 to vector<80x1xi32>
    %34 = arith.cmpi eq, %26, %33 : vector<80x1xi32>
    %c79_i32 = arith.constant 79 : i32
    %35 = tpu.dynamic_rotate %9 by %c79_i32 dim 0 : vector<80x128xf32>, i32 -> vector<80x128xf32>
    %36 = vector.shape_cast %34 : vector<80x1xi1> to vector<80x1xi1>
    %37 = vector.broadcast %36 : vector<80x1xi1> to vector<80x128xi1>
    %38 = arith.select %37, %9, %35 : vector<80x128xi1>, vector<80x128xf32>
    %cst_14 = arith.constant 2.500000e-01 : f32
    %39 = vector.broadcast %cst_14 : f32 to vector<80x128xf32>
    %40 = arith.mulf %39, %32 : vector<80x128xf32>
    %cst_15 = arith.constant 7.500000e-01 : f32
    %41 = vector.broadcast %cst_15 : f32 to vector<80x128xf32>
    %42 = arith.mulf %41, %9 : vector<80x128xf32>
    %43 = arith.addf %40, %42 : vector<80x128xf32>
    %44 = vector.shape_cast %43 : vector<80x128xf32> to vector<10x8x128xf32>
    %cst_16 = arith.constant 7.500000e-01 : f32
    %45 = vector.broadcast %cst_16 : f32 to vector<80x128xf32>
    %46 = arith.mulf %45, %9 : vector<80x128xf32>
    %cst_17 = arith.constant 2.500000e-01 : f32
    %47 = vector.broadcast %cst_17 : f32 to vector<80x128xf32>
    %48 = arith.mulf %47, %38 : vector<80x128xf32>
    %49 = arith.addf %46, %48 : vector<80x128xf32>
    %50 = vector.shape_cast %49 : vector<80x128xf32> to vector<10x8x128xf32>
    %51 = vector.shape_cast %44 : vector<10x8x128xf32> to vector<10x1x8x128xf32>
    %52 = vector.shape_cast %50 : vector<10x8x128xf32> to vector<10x1x8x128xf32>
    %53 = tpu.concatenate %51, %52 in 1 : vector<10x1x8x128xf32>, vector<10x1x8x128xf32> -> vector<10x2x8x128xf32>
    %54 = vector.extract_strided_slice %53 {offsets = [0, 0, 0, 0], sizes = [8, 2, 8, 128], strides = [1, 1, 1, 1]} : vector<10x2x8x128xf32> to vector<8x2x8x128xf32>
    %55 = vector.extract_strided_slice %53 {offsets = [1, 0, 0, 0], sizes = [8, 2, 8, 128], strides = [1, 1, 1, 1]} : vector<10x2x8x128xf32> to vector<8x2x8x128xf32>
    %56 = vector.extract_strided_slice %53 {offsets = [2, 0, 0, 0], sizes = [8, 2, 8, 128], strides = [1, 1, 1, 1]} : vector<10x2x8x128xf32> to vector<8x2x8x128xf32>
    %cst_18 = arith.constant 2.500000e-01 : f32
    %57 = vector.broadcast %cst_18 : f32 to vector<8x2x8x128xf32>
    %58 = arith.mulf %57, %54 : vector<8x2x8x128xf32>
    %cst_19 = arith.constant 7.500000e-01 : f32
    %59 = vector.broadcast %cst_19 : f32 to vector<8x2x8x128xf32>
    %60 = arith.mulf %59, %55 : vector<8x2x8x128xf32>
    %61 = arith.addf %58, %60 : vector<8x2x8x128xf32>
    %cst_20 = arith.constant 7.500000e-01 : f32
    %62 = vector.broadcast %cst_20 : f32 to vector<8x2x8x128xf32>
    %63 = arith.mulf %62, %55 : vector<8x2x8x128xf32>
    %cst_21 = arith.constant 2.500000e-01 : f32
    %64 = vector.broadcast %cst_21 : f32 to vector<8x2x8x128xf32>
    %65 = arith.mulf %64, %56 : vector<8x2x8x128xf32>
    %66 = arith.addf %63, %65 : vector<8x2x8x128xf32>
    %67 = vector.shape_cast %61 : vector<8x2x8x128xf32> to vector<8x1x2x8x128xf32>
    %68 = vector.shape_cast %66 : vector<8x2x8x128xf32> to vector<8x1x2x8x128xf32>
    %69 = tpu.concatenate %67, %68 in 1 : vector<8x1x2x8x128xf32>, vector<8x1x2x8x128xf32> -> vector<8x2x2x8x128xf32>
    %70 = vector.shape_cast %69 : vector<8x2x2x8x128xf32> to vector<16x2x8x128xf32>
    %cst_22 = arith.constant 0.000000e+00 : f32
    %71 = vector.broadcast %cst_22 : f32 to vector<16x2x8x128xf32>
    %72 = arith.maximumf %70, %71 : vector<16x2x8x128xf32>
    %c0_23 = arith.constant 0 : index
    %c0_24 = arith.constant 0 : index
    %c0_25 = arith.constant 0 : index
    %c0_26 = arith.constant 0 : index
    %c0_27 = arith.constant 0 : index
    %73 = vector.load %arg3[%c0_23, %c0_24, %c0_25, %c0_26, %c0_27] : memref<1x16x2x8x128xbf16, #tpu.memory_space<vmem>>, vector<1x16x2x8x128xbf16>
    %74 = vector.shape_cast %73 : vector<1x16x2x8x128xbf16> to vector<16x2x8x128xbf16>
    %75 = arith.extf %74 : vector<16x2x8x128xbf16> to vector<16x2x8x128xf32>
    %76 = arith.addf %72, %75 : vector<16x2x8x128xf32>
    %cst_28 = arith.constant dense<0.000000e+00> : vector<16x2x8xf32>
    %77 = vector.multi_reduction <add>, %76, %cst_28 [3] : vector<16x2x8x128xf32> to vector<16x2x8xf32>
    %78 = vector.shape_cast %77 : vector<16x2x8xf32> to vector<16x2x8x1xf32>
    %cst_29 = arith.constant 1.250000e-01 : f32
    %79 = vector.broadcast %cst_29 : f32 to vector<16x2x8x1xf32>
    %80 = arith.mulf %78, %79 : vector<16x2x8x1xf32>
    %81 = tpu.iota {dimensions = array<i32: 3>} : vector<1x1x1x128xi32>
    %c8_i32_30 = arith.constant 8 : i32
    %82 = vector.broadcast %c8_i32_30 : i32 to vector<1x1x1x128xi32>
    %83 = arith.cmpi slt, %81, %82 : vector<1x1x1x128xi32>
    %84 = arith.extui %83 : vector<1x1x1x128xi1> to vector<1x1x1x128xi32>
    %85 = arith.sitofp %84 : vector<1x1x1x128xi32> to vector<1x1x1x128xf32>
    %86 = vector.broadcast %80 : vector<16x2x8x1xf32> to vector<16x2x8x128xf32>
    %87 = arith.subf %76, %86 : vector<16x2x8x128xf32>
    %88 = vector.broadcast %85 : vector<1x1x1x128xf32> to vector<16x2x8x128xf32>
    %89 = arith.mulf %87, %88 : vector<16x2x8x128xf32>
    %90 = arith.mulf %89, %89 : vector<16x2x8x128xf32>
    %cst_31 = arith.constant dense<0.000000e+00> : vector<16x2x8xf32>
    %91 = vector.multi_reduction <add>, %90, %cst_31 [3] : vector<16x2x8x128xf32> to vector<16x2x8xf32>
    %92 = vector.shape_cast %91 : vector<16x2x8xf32> to vector<16x2x8x1xf32>
    %cst_32 = arith.constant 1.250000e-01 : f32
    %93 = vector.broadcast %cst_32 : f32 to vector<16x2x8x1xf32>
    %94 = arith.mulf %92, %93 : vector<16x2x8x1xf32>
    %cst_33 = arith.constant 9.99999974E-6 : f32
    %95 = vector.broadcast %cst_33 : f32 to vector<16x2x8x1xf32>
    %96 = arith.addf %94, %95 : vector<16x2x8x1xf32>
    %97 = math.rsqrt %96 : vector<16x2x8x1xf32>
    %98 = vector.broadcast %97 : vector<16x2x8x1xf32> to vector<16x2x8x128xf32>
    %99 = arith.mulf %89, %98 : vector<16x2x8x128xf32>
    %c0_34 = arith.constant 0 : index
    %c0_35 = arith.constant 0 : index
    %100 = vector.load %arg7[%c0_34, %c0_35] : memref<1x128xf32, #tpu.memory_space<vmem>>, vector<1x128xf32>
    %101 = vector.shape_cast %100 : vector<1x128xf32> to vector<1x1x1x128xf32>
    %102 = vector.broadcast %101 : vector<1x1x1x128xf32> to vector<16x2x8x128xf32>
    %103 = arith.mulf %99, %102 : vector<16x2x8x128xf32>
    %c0_36 = arith.constant 0 : index
    %c0_37 = arith.constant 0 : index
    %104 = vector.load %arg8[%c0_36, %c0_37] : memref<1x128xf32, #tpu.memory_space<vmem>>, vector<1x128xf32>
    %105 = vector.shape_cast %104 : vector<1x128xf32> to vector<1x1x1x128xf32>
    %106 = vector.broadcast %105 : vector<1x1x1x128xf32> to vector<16x2x8x128xf32>
    %107 = arith.addf %103, %106 : vector<16x2x8x128xf32>
    %108 = arith.truncf %107 : vector<16x2x8x128xf32> to vector<16x2x8x128xbf16>
    %c0_38 = arith.constant 0 : index
    %c0_39 = arith.constant 0 : index
    %c0_40 = arith.constant 0 : index
    %c0_41 = arith.constant 0 : index
    %c0_42 = arith.constant 0 : index
    %109 = vector.load %arg9[%c0_38, %c0_39, %c0_40, %c0_41, %c0_42] : memref<1x16x2x8x128xbf16, #tpu.memory_space<vmem>>, vector<1x16x2x8x128xbf16>
    %110 = vector.shape_cast %109 : vector<1x16x2x8x128xbf16> to vector<16x2x8x128xbf16>
    %111 = vector.shape_cast %108 : vector<16x2x8x128xbf16> to vector<1x16x2x8x128xbf16>
    tpu.vector_store %arg9[%c0_38, %c0_39, %c0_40, %c0_41, %c0_42], %111 {strides = array<i32>} : memref<1x16x2x8x128xbf16, #tpu.memory_space<vmem>>, vector<1x16x2x8x128xbf16>,
    return
  }
  func.func @transform_0(%arg0: i32, %arg1: i32) -> (i32, i32, i32, i32) {
    %c0_i32 = arith.constant 0 : i32
    %c0_i32_0 = arith.constant 0 : i32
    %c0_i32_1 = arith.constant 0 : i32
    return %arg0, %arg1, %c0_i32, %c0_i32_0 : i32, i32, i32, i32
  }
  func.func @transform_1(%arg0: i32, %arg1: i32) -> (i32, i32, i32, i32, i32) {
    %c0_i32 = arith.constant 0 : i32
    %c0_i32_0 = arith.constant 0 : i32
    %c0_i32_1 = arith.constant 0 : i32
    %c0_i32_2 = arith.constant 0 : i32
    return %arg0, %arg1, %c0_i32, %c0_i32_0, %c0_i32_1 : i32, i32, i32, i32, i32
  }
  func.func @transform_2(%arg0: i32, %arg1: i32) -> (i32, i32) {
    %c0_i32 = arith.constant 0 : i32
    %c0_i32_0 = arith.constant 0 : i32
    %c0_i32_1 = arith.constant 0 : i32
    return %c0_i32, %c0_i32_0 : i32, i32
  }
  func.func @transform_3(%arg0: i32, %arg1: i32) -> (i32, i32) {
    %c0_i32 = arith.constant 0 : i32
    %c0_i32_0 = arith.constant 0 : i32
    %c0_i32_1 = arith.constant 0 : i32
    return %c0_i32, %c0_i32_0 : i32, i32
  }
  func.func @transform_4(%arg0: i32, %arg1: i32) -> (i32, i32) {
    %c0_i32 = arith.constant 0 : i32
    %c0_i32_0 = arith.constant 0 : i32
    %c0_i32_1 = arith.constant 0 : i32
    return %c0_i32, %c0_i32_0 : i32, i32
  }
  func.func @transform_5(%arg0: i32, %arg1: i32) -> (i32, i32) {
    %c0_i32 = arith.constant 0 : i32
    %c0_i32_0 = arith.constant 0 : i32
    %c0_i32_1 = arith.constant 0 : i32
    return %c0_i32, %c0_i32_0 : i32, i32
  }
  func.func @transform_6(%arg0: i32, %arg1: i32) -> (i32, i32) {
    %c0_i32 = arith.constant 0 : i32
    %c0_i32_0 = arith.constant 0 : i32
    %c0_i32_1 = arith.constant 0 : i32
    return %c0_i32, %c0_i32_0 : i32, i32
  }
  func.func @transform_7(%arg0: i32, %arg1: i32) -> (i32, i32, i32, i32, i32) {
    %c0_i32 = arith.constant 0 : i32
    %c0_i32_0 = arith.constant 0 : i32
    %c0_i32_1 = arith.constant 0 : i32
    %c0_i32_2 = arith.constant 0 : i32
    return %arg0, %arg1, %c0_i32, %c0_i32_0, %c0_i32_1 : i32, i32, i32, i32, i32
  }
}

</mosaic_0001>

<bundles_post_ra>
// kernel: tpu_custom_call.1
= control target key start
LH: loop header
LB: loop body
LE: loop exit
PB: predicated region body
PF: predicated region fallthrough
CT: control target
= control target key end

     0   :  { %s4008_s0 = inlined_call_operand.hbm [shape: bf16[2,1,80,128], index: 0, kind: input, shape index: {}]   ;;  %s4009_s1 = inlined_call_operand.hbm [shape: bf16[2,16,2,8,128], index: 1, kind: input, shape index: {}]   ;;  %s4010_s2 = inlined_call_operand.hbm [shape: bf16[128,128], index: 2, kind: input, shape index: {}]   ;;  %s4011_s3 = inlined_call_operand.vmem [shape: f32[1,128], index: 3, kind: input, shape index: {}]   ;;  %s4012_s4 = inlined_call_operand.vmem [shape: f32[1,128], index: 4, kind: input, shape index: {}]   ;;  %s4013_s5 = inlined_call_operand.vmem [shape: f32[1,128], index: 5, kind: input, shape index: {}]   ;;  %s4014_s6 = inlined_call_operand.vmem [shape: f32[1,128], index: 6, kind: input, shape index: {}]   ;;  %s4015_s7 = inlined_call_operand.hbm [shape: bf16[2,16,2,8,128], index: 7, kind: output, shape index: {}]  }
   0x1   :  { %4026 = sst [smem:[#allocation19_spill]] %s4010_s2 }
   0x2   :  { %12 = vsyncpa [#allocation3], 0 }
   0x3   :  { %14 = vsyncpa [#allocation3 + $0x1], 0 }
   0x4   :  { %15 = vsyncpa [#allocation6], 0 }
   0x5   :  { %17 = vsyncpa [#allocation6 + $0x1], 0 }
   0x6   :  { %18 = vsyncpa [#allocation4], 0 }
   0x7   :  { %20 = vsyncpa [#allocation4 + $0x1], 0  ;;  %s2668_s24 = smov 0   ;;  %s2670_s25 = smov 0  }
   0x8   :  { %s2672_s26 = smov 0   ;;  %s2674_s27 = smov 0  }
   0x9   :  { %s2676_s28 = smov 0   ;;  %s2678_s29 = smov 0  }
   0xa LB: > { %4027 = sst [smem:[#allocation13_spill]] %s2600_s24  ;;  %s2699_s30 = sadd.s32 4294967295, %s2620_s29   ;;  %s2620_s29 = sphi %s2678_s29, %s26_s29   ;;  %s2616_s28 = sphi %s2676_s28, %s4084_s28   ;;  %s2612_s27 = sphi %s2674_s27, %s4083_s27   ;;  %s2608_s26 = sphi %s2672_s26, %s4079_s26   ;;  %s2604_s25 = sphi %s2670_s25, %s4082_s25   ;;  %s2600_s24 = sphi %s2668_s24, %s4081_s24  }
   0xb   : > { %4028 = sst [smem:[#allocation14_spill]] %s2608_s26  ;;  %s2002_s8 = sadd.s32 4294967294, %s2620_s29  }
   0xc   : > { %p60_p0 = scmp.ne.s32.totalorder %s2604_s25, %s2600_s24  ;;  %p61_p1 = scmp.eq.s32.totalorder %s2699_s30, 0 }
   0xd   : > { %p219_p2 = scmp.eq.s32.totalorder %s2699_s30, 1  ;;  %p225_p3 = scmp.eq.s32.totalorder %s2002_s8, 1 }
   0xe   : > { %p2708_p4 = por %p61_p1, %p60_p0  ;;  %p2003_p5 = scmp.ge.s32.totalorder %s2620_s29, 1 }
   0xf   : > { %p2713_p6 = por %p225_p3, %p60_p0  ;;  %p232_p7 = scmp.lt.s32.totalorder %s2620_s29, 3 }
  0x10   : > { %s4032_s2 = sld [smem:[#allocation19_spill]]  ;;  %s2622_s15 = smov [#allocation7]  }
  0x11   : > { %s4030_s10 = scalar_select %p2713_p6, 1, 0 }
  0x12   : > { %p2721_p8 = pnand %p2003_p5, %p232_p7  ;;  %s245_s16 = sshll.u32 %s2622_s15, 4  ;;  %s246_s16 = int_to_ptr.vmem [resolvable:$true] %s245_s16 }
  0x13   : > { %4031 = sst [smem:[#allocation15_spill]] %s4030_s10  ;;  %p2005_p11 = scmp.ge.s32.totalorder %s2620_s29, 2 }
  0x14   : > { %p2298_p9 = pneg %p2721_p8  ;;  %s4016_s17 = smov 64  }
  0x15   : > { %s4018_s18 = smov 4   ;;  %s38_s19 = sadd.s32 1, %s2616_s28 }
  0x16   : > { %s243_s13 = sshll.u32 %s4032_s2, 4  ;;  %p2299_p10 = pnand %p2298_p9, %p61_p1  ;;  %s244_s13 = int_to_ptr.hbm [resolvable:$true] %s243_s13 }
  0x17   : > { %p40_p12 = scmp.ge.s32.totalorder %s38_s19, 2  ;;  %s47_s20 = sadd.s32 1, %s2608_s26 }
  0x18   : > { %2301 = dma.hbm_to_vmem [thread:$0]  (!%p2299_p10), %s244_s13, 1024, %s246_s16, [#allocation6], %s4016_s17, %s4016_s17, %s4018_s18  }
  0x19   : > { %p54_p13 = scmp.ne.s32.totalorder %s2608_s26, %s2604_s25  ;;  %p55_p0 = scmp.eq.s32.totalorder %s2620_s29, 0 }
  0x1a   : > { %s4086_s19 = smov (%p40_p12, %s38_s19), 0  ;;  %p2314_p7 = scmp.lt.s32.totalorder %s2620_s29, 2 }
  0x1b   : > { %4034 = sst [smem:[#allocation16_spill]] %s4086_s19  ;;  %p56_p3 = por %p55_p0, %p54_p13 }
  0x1c   : > { %p2742_p5 = por %p219_p2, %p54_p13  ;;  %s42_s22 = ssub.s32 %s2616_s28, %s4086_s19 }
  0x1d   : > { %p45_p9 = scmp.eq.s32.totalorder %s42_s22, 0  ;;  %s271_s23 = sand.u32 1, %s2608_s26  }
  0x1e   : > { %s4035_s21 = scalar_select %p2742_p5, 1, 0 }
  0x1f   : > { %s2285_s8 = smul.u32 40, %s271_s23  ;;  %p2754_p10 = pnand %p2314_p7, %p56_p3 }
  0x20   : > { %4036 = sst [smem:[#allocation17_spill]] %s4035_s21  ;;  %s2286_s12 = smul.u32 40, %s2616_s28 }
  0x21   : > { %s2751_s11 = scalar_select %p45_p9, %s2608_s26, %s47_s20  }
  0x22   : > { %s275_s13 = scalar_lea.vmem [#allocation2], %s2285_s8  ;;  %s282_s2 = scalar_lea.hbm %s4008_s0, %s2286_s12 }
  0x23   : > { %4037 = sst [smem:[#allocation18_spill]] %s2751_s11  ;;  %s285_s15 = sshll.u32 %s275_s13, 4  ;;  %s286_s15 = int_to_ptr.vmem [resolvable:$true] %s285_s15 }
  0x24   : > { %s283_s22 = sshll.u32 %s282_s2, 4  ;;  %s295_s19 = sand.u32 1, %s2620_s29   ;;  %s284_s22 = int_to_ptr.hbm [resolvable:$true] %s283_s22 }
  0x25   : > { %s272_s10 = scalar_lea.sflag [#allocation3], %s271_s23  ;;  %s4039_s20 = smov 4  }
  0x26   : > { %s4040_s11 = smov 64   ;;  %s2007_s8 = sshll.u32 %s271_s23, 7 }
  0x27   : > { %2305 = dma.hbm_to_vmem [thread:$0]  (!%p2754_p10), %s284_s22, 640, %s286_s15, %s272_s10, %s4040_s11, %s4040_s11, %s4039_s20  }
  0x28   : > { %s2072_s13 = sshll.u32 %s2616_s28, 7  ;;  %s299_s17 = scalar_lea.vmem [#allocation5], %s2007_s8 }
  0x29   : > { %s307_s21 = scalar_lea.hbm %s4009_s1, %s2072_s13  ;;  %s310_s18 = sshll.u32 %s299_s17, 4  ;;  %s311_s18 = int_to_ptr.vmem [resolvable:$true] %s310_s18 }
  0x2a   : > { %s308_s12 = sshll.u32 %s307_s21, 4  ;;  %s296_s2 = scalar_lea.sflag [#allocation6], %s295_s19  ;;  %s309_s12 = int_to_ptr.hbm [resolvable:$true] %s308_s12 }
  0x2b   : > { %2308 = dma.hbm_to_vmem [thread:$0]  (!%p2754_p10), %s309_s12, 2048, %s311_s18, %s296_s2, %s4040_s11, %s4040_s11, %s4039_s20  }
  0x2c   : > { %322 = sbr.rel (%p2721_p8) target bundleno = 625 (0x271), region = 48  ;;  %s2779_s10 = sand.u32 (!%p2721_p8), 1, %s2604_s25  }
  0x2d   : > { %s2287_s24 = smul.u32 (!%p2721_p8), 40, %s2779_s10  ;;  %s325_s26 = scalar_lea.sflag (!%p2721_p8), [#allocation3], %s2779_s10 }
  0x2f   : > { %s2783_s21 = scalar_lea.vmem (!%p2721_p8), [#allocation2], %s2287_s24 }
  0x31   : > { %2583 = dma.done.wait (%p2708_p4), %s325_s26, 640  }
  0x32   : > { %2585 = vsyncadd (%p2708_p4), %s325_s26, 4294966656  ;;  %s334_s14 = sand.u32 1, %s2699_s30   ;;  %s2011_s19 = sshll.u32 %s2779_s10, 7 }
  0x33   : > { %s335_s23 = scalar_lea.sflag [#allocation6], %s334_s14  ;;  %s2793_s11 = scalar_lea.vmem [#allocation5], %s2011_s19 }
  0x34   : > { %2587 = dma.done.wait (%p2708_p4), %s335_s23, 2048  }
  0x35   : > { %2589 = vsyncadd (%p2708_p4), %s335_s23, 4294965248 }
  0x36   : > { %2591 = dma.done.wait (%p61_p1), [#allocation6], 1024  }
  0x37   : > { %2593 = vsyncadd (%p61_p1), [#allocation6], 4294966272  ;;  %v2085_v0 = vld [vmem:[#allocation7 + $0x38] sm:$0xff]  ;;  %v2084_v1 = vld [vmem:[#allocation7 + $0x30] sm:$0xff]  ;;  %v548_v13 = vlaneseq  ;;  %s3572_s17 = scalar_lea.vmem [#allocation8], %s2011_s19  ;;  %s2086_s18 = sshll.u32 %s2612_s27, 7 }
  0x38   : > { %486 = vmatpush.bf16.msra.mxu0 %v2085_v0  ;;  %2261 = vmatpush.bf16.msra.mxu1 %v2085_v0  ;;  %v2083_v2 = vld [vmem:[#allocation7 + $0x28] sm:$0xff]  ;;  %v2082_v3 = vld [vmem:[#allocation7 + $0x20] sm:$0xff]  ;;  %v2081_v4 = vld [vmem:[#allocation7 + $0x18] sm:$0xff]  ;;  %s1876_s14 = sshll.u32 %s3572_s17, 4  ;;  %s1861_s23 = scalar_lea.sflag [#allocation4], %s2779_s10  ;;  %s1877_s14 = int_to_ptr.vmem [resolvable:$true] %s1876_s14 }
  0x39   : > { %2262 = vmatpush.bf16.msra.mxu2 %v2085_v0  ;;  %2263 = vmatpush.bf16.msra.mxu3 %v2085_v0  ;;  %v2080_v5 = vld [vmem:[#allocation7 + $0x10] sm:$0xff]  ;;  %v2079_v6 = vld [vmem:[#allocation7 + $0x8] sm:$0xff]  ;;  %v2078_v7 = vld [vmem:[#allocation7] sm:$0xff]  ;;  %v2809_v14 = vshrl.u32 %v548_v13, 7  ;;  %s2550_s16 = scalar_lea.hbm %s4015_s7, 256 }
  0x3a   : > { %v2073_v8 = vld [vmem:[%s2783_s21] sm:$0xff]  ;;  %v2074_v9 = vld [vmem:[%s2783_s21 + $0x8] sm:$0xff]  ;;  %v2075_v10 = vld [vmem:[%s2783_s21 + $0x10] sm:$0xff] }
  0x3b   : > { %v2076_v11 = vld [vmem:[%s2783_s21 + $0x18] sm:$0xff]  ;;  %v2077_v12 = vld [vmem:[%s2783_s21 + $0x20] sm:$0xff]  ;;  %v550_v18 = vadd.s32 8, %v2809_v14  ;;  %v551_v19 = vadd.s32 16, %v2809_v14  ;;  %v552_v21 = vadd.s32 24, %v2809_v14  ;;  %v563_v24 = vand.u32 7, %v2809_v14  ;;  %s1875_s21 = scalar_lea.hbm %s4015_s7, %s2086_s18 }
  0x3c   : > { %487 = vmatpush.bf16.msra.mxu0 %v2084_v1  ;;  %2264 = vmatpush.bf16.msra.mxu1 %v2084_v1  ;;  %v2814_v17 = vld [vmem:[%s4011_s3] ss:$0 sm:$0xff]  ;;  %vm760_vm0 = vcmp.lt.s32.totalorder %v2809_v14, 7  ;;  %vm699_vm1 = vcmp.lt.s32.totalorder %v2809_v14, 1  ;;  %v2835_v32 = vadd.s32 32, %v2809_v14  ;;  %v2849_v38 = vld [vmem:[%s2793_s11] sm:$0xff]  }
  0x3d   : > { %2265 = vmatpush.bf16.msra.mxu2 %v2084_v1  ;;  %2266 = vmatpush.bf16.msra.mxu3 %v2084_v1  ;;  %v2824_v23 = vld [vmem:[%s4012_s4] ss:$0 sm:$0xff]  ;;  %v570_v25 = vand.u32 7, %v550_v18  ;;  %v577_v26 = vand.u32 7, %v551_v19  ;;  %v584_v29 = vand.u32 7, %v552_v21  ;;  %vm2844_vm2 = vcmp.eq.s32.totalorder %v563_v24, 7 }
  0x3e   : > { %v2852_v39 = vld [vmem:[%s2793_s11 + $0x10] sm:$0xff]   ;;  %v2874_v48 = vld [vmem:[%s2793_s11 + $0x8] sm:$0xff]   ;;  %v2090_v50 = vunpack.c.h.bf16 %v2849_v38  ;;  %v591_v53 = vand.u32 7, %v2835_v32  ;;  %s1878_s19 = sshll.u32 %s1875_s21, 4  ;;  %s1879_s19 = int_to_ptr.hbm [resolvable:$true] %s1878_s19 }
  0x3f   : > { %vm2855_vm3 = vcmp.eq.s32.totalorder %v570_v25, 7  ;;  %vm2859_vm4 = vcmp.eq.s32.totalorder %v570_v25, 0  ;;  %vm2863_vm5 = vcmp.eq.s32.totalorder %v577_v26, 0  ;;  %vm2876_vm6 = vcmp.eq.s32.totalorder %v584_v29, 0 }
  0x40   : > { %488 = vmatpush.bf16.msra.mxu0 %v2083_v2  ;;  %2267 = vmatpush.bf16.msra.mxu1 %v2083_v2  ;;  %v2097_v51 = vunpack.c.l.bf16 %v2852_v39  ;;  %vm2882_vm7 = vcmp.eq.s32.totalorder %v577_v26, 7  ;;  %v2093_v61 = vunpack.c.l.bf16 %v2874_v48  ;;  %vm2895_vm8 = vcmp.eq.s32.totalorder %v584_v29, 7 }
  0x41   : > { %2268 = vmatpush.bf16.msra.mxu2 %v2083_v2  ;;  %2269 = vmatpush.bf16.msra.mxu3 %v2083_v2  ;;  %vm2931_vm9 = vcmp.eq.s32.totalorder %v591_v53, 0  ;;  %vm3019_vm10 = vcmp.eq.s32.totalorder %v591_v53, 7 }
  0x44   : > { %489 = vmatpush.bf16.msra.mxu0 %v2082_v3  ;;  %2270 = vmatpush.bf16.msra.mxu1 %v2082_v3 }
  0x45   : > { %2271 = vmatpush.bf16.msra.mxu2 %v2082_v3  ;;  %2272 = vmatpush.bf16.msra.mxu3 %v2082_v3 }
  0x48   : > { %490 = vmatpush.bf16.msra.mxu0 %v2081_v4  ;;  %2273 = vmatpush.bf16.msra.mxu1 %v2081_v4 }
  0x49   : > { %2274 = vmatpush.bf16.msra.mxu2 %v2081_v4  ;;  %2275 = vmatpush.bf16.msra.mxu3 %v2081_v4 }
  0x4c   : > { %491 = vmatpush.bf16.msra.mxu0 %v2080_v5  ;;  %2276 = vmatpush.bf16.msra.mxu1 %v2080_v5 }
  0x4d   : > { %2277 = vmatpush.bf16.msra.mxu2 %v2080_v5  ;;  %2278 = vmatpush.bf16.msra.mxu3 %v2080_v5 }
  0x50   : > { %492 = vmatpush.bf16.msra.mxu0 %v2079_v6  ;;  %2279 = vmatpush.bf16.msra.mxu1 %v2079_v6 }
  0x51   : > { %2280 = vmatpush.bf16.msra.mxu2 %v2079_v6  ;;  %2281 = vmatpush.bf16.msra.mxu3 %v2079_v6 }
  0x54   : > { %493 = vmatpush.bf16.msra.mxu0 %v2078_v7  ;;  %2282 = vmatpush.bf16.msra.mxu1 %v2078_v7 }
  0x55   : > { %2283 = vmatpush.bf16.msra.mxu2 %v2078_v7  ;;  %2284 = vmatpush.bf16.msra.mxu3 %v2078_v7 }
  0x57   : > { %494 = vmatmul.bf16.vlgmr.msra.gmra.mxu0 %v2073_v8  ;;  %499 = vmatmul.bf16.vlgmr.msra.gmra.mxu1 %v2074_v9 }
  0x58   : > { %504 = vmatmul.bf16.vlgmr.msra.gmra.mxu2 %v2075_v10  ;;  %509 = vmatmul.bf16.vlgmr.msra.gmra.mxu3 %v2076_v11 }
  0x68   : > { %514 = vmatmul.bf16.gmra.mxu3 %v2077_v12  ;;  %v2927_v12 = vld [vmem:[%s2793_s11 + $0x18] sm:$0xff]  }
  0xd4   : > { %v495_v15 = vpop.f32.mrf.mxu0  ;;  %v500_v16 = vpop.f32.mrf.mxu1 }
  0xd5   : > { %v526_v20 = vmul.f32 %v2814_v17, %v500_v16  ;;  %v524_v22 = vmul.f32 %v2814_v17, %v495_v15 }
  0xd7   : > { %v2828_v27 = vadd.f32 %v2824_v23, %v526_v20  ;;  %v2838_v33 = vadd.f32 %v2824_v23, %v524_v22 }
  0xd9   : > { %v691_v44 = vrot.slane %v2828_v27, 7  ;;  %v752_v45 = vrot.slane %v2828_v27, 1  ;;  %v689_v54 = vrot.slane %v2838_v33, 7  ;;  %v750_v55 = vrot.slane %v2838_v33, 1 }
  0xda   : > { %v2919_v6 = vmul.f32 0.75, %v2838_v33  ;;  %v813_v20 = vmul.f32 0.75, %v2828_v27 }
  0xdb   : > { %v2830_v28 = vpop.f32.mrf.mxu3  ;;  %v505_v34 = vpop.f32.mrf.mxu2 }
  0xdc   : > { %v497_v30 = vpop.f32.mrf.mxu0  ;;  %v502_v31 = vpop.f32.mrf.mxu1  ;;  %v528_v40 = vmul.f32 %v2814_v17, %v505_v34  ;;  %v2946_v34 = vadd.s32 40, %v2809_v14 }
  0xdd   : > { %v525_v35 = vmul.f32 %v2814_v17, %v497_v30  ;;  %v527_v36 = vmul.f32 %v2814_v17, %v502_v31  ;;  %v2101_v30 = vunpack.c.l.bf16 %v2927_v12  ;;  %v2098_v31 = vunpack.c.h.bf16 %v2852_v39 }
  0xde   : > { %v2890_v58 = vadd.f32 %v2824_v23, %v528_v40 }
  0xdf   : > { %v539_v46 = vadd.f32 %v2824_v23, %v525_v35  ;;  %v2871_v47 = vadd.f32 %v2824_v23, %v527_v36 }
  0xe0   : > { %v754_v16 = vrot.slane %v2890_v58, 1  ;;  %v693_v29 = vrot.slane %v2890_v58, 7 }
  0xe1   : > { %v690_v56 = vrot.slane %v539_v46, 7  ;;  %v751_v57 = vrot.slane %v539_v46, 1  ;;  %v692_v59 = vrot.slane %v2871_v47, 7  ;;  %v753_v60 = vrot.slane %v2871_v47, 1 }
  0xe2   : > { %v812_v7 = vmul.f32 0.75, %v539_v46  ;;  %v814_v43 = vmul.f32 0.75, %v2871_v47 }
  0xe3   : > { %v2899_v63 = vpop.f32.mrf.mxu3  ;;  %v768_v0 = vsel %vm760_vm0, %v751_v57, %v752_v45  ;;  %v769_v1 = vsel %vm760_vm0, %v750_v55, %v751_v57  ;;  %v707_v2 = vsel %vm699_vm1, %v690_v56, %v691_v44  ;;  %v708_v3 = vsel %vm699_vm1, %v689_v54, %v690_v56  ;;  %v507_v35 = vpop.f32.mrf.mxu2 }
  0xe4   : > { %v791_v4 = vsel %vm2844_vm2, %v2838_v33, %v769_v1  ;;  %v792_v5 = vsel %vm2855_vm3, %v539_v46, %v768_v0  ;;  %v731_v10 = vsel %vm2859_vm4, %v539_v46, %v708_v3  ;;  %v732_v11 = vsel %vm2863_vm5, %v2828_v27, %v707_v2 }
  0xe5   : > { %v831_v8 = vmul.f32 0.25, %v791_v4  ;;  %v832_v9 = vmul.f32 0.25, %v792_v5  ;;  %v802_v18 = vmul.f32 0.25, %v731_v10  ;;  %v803_v19 = vmul.f32 0.25, %v732_v11 }
  0xe6   : > { %v706_v25 = vsel %vm699_vm1, %v691_v44, %v692_v59  ;;  %v767_v26 = vsel %vm760_vm0, %v752_v45, %v753_v60  ;;  %v766_v45 = vsel %vm760_vm0, %v753_v60, %v754_v16  ;;  %v529_v49 = vmul.f32 %v2814_v17, %v507_v35 }
  0xe7   : > { %v841_v21 = vadd.f32 %v831_v8, %v2919_v6  ;;  %v842_v22 = vadd.f32 %v832_v9, %v812_v7  ;;  %v822_v40 = vadd.f32 %v812_v7, %v802_v18  ;;  %v823_v41 = vadd.f32 %v813_v20, %v803_v19 }
  0xe8   : > { %v733_v42 = vsel %vm2876_vm6, %v2871_v47, %v706_v25  ;;  %v793_v44 = vsel %vm2882_vm7, %v2828_v27, %v767_v26  ;;  %v794_v27 = vsel %vm2895_vm8, %v2871_v47, %v766_v45  ;;  %v705_v60 = vsel %vm699_vm1, %v692_v59, %v693_v29 }
  0xe9   : > { %v852_v36 = vmul.f32 0.25, %v841_v21  ;;  %v868_v37 = vmul.f32 0.75, %v842_v22  ;;  %v853_v57 = vmul.f32 0.25, %v822_v40  ;;  %v869_v0 = vmul.f32 0.75, %v823_v41 }
  0xea   : > { %v855_v1 = vmul.f32 0.25, %v823_v41  ;;  %v2962_v2 = vmul.f32 0.75, %v822_v40  ;;  %v804_v3 = vmul.f32 0.25, %v733_v42  ;;  %v833_v4 = vmul.f32 0.25, %v793_v44  ;;  %v3004_v44 = vld [vmem:[%s2793_s11 + $0x20] sm:$0xff]  }
  0xeb   : > { %v2959_v46 = vpop.f32.mrf.mxu3  ;;  %v884_v56 = vadd.f32 %v868_v37, %v852_v36  ;;  %v885_v52 = vadd.f32 %v869_v0, %v853_v57  ;;  %v530_v7 = vmul.f32 %v2814_v17, %v2830_v28  ;;  %v854_v19 = vmul.f32 0.25, %v842_v22 }
  0xec   : > { %v903_v8 = vadd.f32 %v2962_v2, %v855_v1  ;;  %v824_v9 = vadd.f32 %v814_v43, %v804_v3  ;;  %v843_v10 = vadd.f32 %v833_v4, %v813_v20  ;;  %v834_v62 = vmul.f32 0.25, %v794_v27 }
  0xed   : > { %v920_v5 = vmax.f32 %v884_v56, 0.0  ;;  %v923_v18 = vmax.f32 %v885_v52, 0.0  ;;  %v2979_v47 = vadd.f32 %v2824_v23, %v529_v49  ;;  %v734_v28 = vsel %vm2931_vm9, %v2890_v58, %v705_v60 }
  0xee   : > { %v921_v21 = vmax.f32 %v903_v8, 0.0  ;;  %v2981_v25 = vmul.f32 0.25, %v824_v9  ;;  %v870_v59 = vmul.f32 0.75, %v843_v10  ;;  %v856_v20 = vmul.f32 0.25, %v843_v10 }
  0xef   : > { %v2976_v11 = vadd.f32 %v2090_v50, %v920_v5  ;;  %v2989_v50 = vadd.f32 %v2097_v51, %v923_v18  ;;  %v844_v22 = vadd.f32 %v834_v62, %v814_v43  ;;  %v2992_v26 = vadd.f32 %v2824_v23, %v530_v7 }
  0xf0   : > { %v2996_v35 = vadd.f32 %v2093_v61, %v921_v21  ;;  %v905_v15 = vadd.f32 %v869_v0, %v2981_v25  ;;  %v815_v36 = vmul.f32 0.75, %v2890_v58  ;;  %v886_v41 = vadd.f32 %v870_v59, %v854_v19 }
  0xf1   : > { %1049 = vadd.xlane.f32.xlu0 %v2976_v11  ;;  %1055 = vadd.xlane.f32.xlu2 %v2989_v50  ;;  %v904_v51 = vadd.f32 %v868_v37, %v856_v20  ;;  %v3001_v42 = vmul.f32 0.75, %v844_v22  ;;  %v805_v43 = vmul.f32 0.25, %v734_v28  ;;  %v3008_v56 = vmul.f32 0.25, %v844_v22  ;;  %v3062_v22 = vld [vmem:[%s2793_s11 + $0x30] sm:$0xff]  }
  0xf2   : > { %1051 = vadd.xlane.f32.xlu1 %v2996_v35  ;;  %v925_v61 = vmax.f32 %v905_v15, 0.0  ;;  %v871_v57 = vmul.f32 0.75, %v824_v9  ;;  %v755_v0 = vrot.slane %v2979_v47, 1  ;;  %v924_v49 = vmax.f32 %v886_v41, 0.0 }
  0xf3   : > { %v517_v40 = vpop.f32.mrf.mxu3  ;;  %v2094_v3 = vunpack.c.h.bf16 %v2874_v48  ;;  %v598_v37 = vand.u32 7, %v2946_v34  ;;  %v922_v5 = vmax.f32 %v904_v51, 0.0  ;;  %v2106_v52 = vunpack.c.h.bf16 %v3004_v44 }
  0xf4   : > { %v533_v45 = vmul.f32 %v2814_v17, %v517_v40  ;;  %v756_v60 = vrot.slane %v2992_v26, 1  ;;  %v3026_v7 = vadd.f32 %v2101_v30, %v925_v61  ;;  %v888_v48 = vadd.f32 %v3001_v42, %v856_v20 }
  0xf5   : > { %v825_v34 = vadd.f32 %v815_v36, %v805_v43  ;;  %v906_v8 = vadd.f32 %v870_v59, %v3008_v56  ;;  %v2102_v9 = vunpack.c.h.bf16 %v2927_v12  ;;  %v887_v10 = vadd.f32 %v871_v57, %v855_v1 }
  0xf6   : > { %v3014_v4 = vadd.f32 %v2824_v23, %v533_v45  ;;  %v2105_v32 = vunpack.c.l.bf16 %v3004_v44  ;;  %v694_v53 = vrot.slane %v2979_v47, 7  ;;  %v3036_v18 = vadd.f32 %v2098_v31, %v924_v49 }
  0xf7   : > { %v765_v30 = vsel %vm760_vm0, %v754_v16, %v755_v0  ;;  %vm3042_vm11 = vcmp.eq.s32.totalorder %v598_v37, 0  ;;  %v531_v12 = vmul.f32 %v2814_v17, %v2899_v63  ;;  %v3048_v1 = vadd.f32 %v2094_v3, %v922_v5 }
  0xf8   : > { %v795_v39 = vsel %vm3019_vm10, %v2890_v58, %v765_v30  ;;  %vm745_vm12 = vcmp.eq.s32.totalorder %v598_v37, 7  ;;  %v928_v31 = vmax.f32 %v888_v48, 0.0  ;;  %v873_v62 = vmul.f32 0.75, %v825_v34 }
  0xf9   : > { %1059 = vadd.xlane.f32.xlu0 %v3026_v7  ;;  %1057 = vadd.xlane.f32.xlu2 %v3036_v18  ;;  %v835_v16 = vmul.f32 0.25, %v795_v39  ;;  %v764_v21 = vsel %vm760_vm0, %v755_v0, %v756_v60  ;;  %v695_v28 = vrot.slane %v2992_v26, 7  ;;  %v926_v63 = vmax.f32 %v906_v8, 0.0 }
  0xfa   : > { %1053 = vadd.xlane.f32.xlu1 %v3048_v1  ;;  %v927_v59 = vmax.f32 %v887_v10, 0.0  ;;  %v796_v20 = vsel %vm745_vm12, %v2979_v47, %v764_v21  ;;  %v816_v40 = vmul.f32 0.75, %v2979_v47  ;;  %v704_v51 = vsel %vm699_vm1, %v693_v29, %v694_v53 }
  0xfb   : > { %v845_v15 = vadd.f32 %v835_v16, %v815_v36  ;;  %v836_v41 = vmul.f32 0.25, %v796_v20  ;;  %v3070_v44 = vadd.f32 %v2824_v23, %v531_v12  ;;  %v3072_v43 = vmul.f32 0.25, %v825_v34  ;;  %v2235_v34 = vld [vmem:[%s2793_s11 + $0x28] sm:$0xff]  }
  0xfc   : > { %v735_v45 = vsel %vm3042_vm11, %v2979_v47, %v704_v51  ;;  %v555_v36 = vadd.s32 48, %v2809_v14  ;;  %v3078_v61 = vadd.f32 %v2106_v52, %v928_v31  ;;  %v889_v0 = vadd.f32 %v873_v62, %v2981_v25 }
  0xfd   : > { %v3081_v58 = vmul.f32 0.25, %v845_v15  ;;  %v846_v49 = vadd.f32 %v836_v41, %v816_v40  ;;  %v2113_v29 = vunpack.c.l.bf16 %v3062_v22  ;;  %v806_v3 = vmul.f32 0.25, %v735_v45 }
  0xfe   : > { %v605_v37 = vand.u32 7, %v555_v36  ;;  %v703_v5 = vsel %vm699_vm1, %v694_v53, %v695_v28  ;;  %v532_v47 = vmul.f32 %v2814_v17, %v2959_v46  ;;  %v3091_v52 = vadd.f32 %v2102_v9, %v926_v63 }
  0xff   : > { %v3093_v25 = vadd.f32 %v2105_v32, %v927_v59  ;;  %v908_v27 = vadd.f32 %v3001_v42, %v3081_v58  ;;  %v907_v48 = vadd.f32 %v871_v57, %v3072_v43  ;;  %v826_v8 = vadd.f32 %v816_v40, %v806_v3  ;;  %v2237_v40 = vld [vmem:[%s2793_s11 + $0x38] sm:$0xff]  }
 0x100   : > { %vm685_vm13 = vcmp.eq.s32.totalorder %v605_v37, 0  ;;  %v817_v10 = vmul.f32 0.75, %v2992_v26  ;;  %v757_v53 = vrot.slane %v3070_v44, 1  ;;  %v931_v17 = vmax.f32 %v889_v0, 0.0 }
 0x101   : > { %1065 = vadd.xlane.f32.xlu0 %v3078_v61  ;;  %1063 = vadd.xlane.f32.xlu2 %v3093_v25  ;;  %v3102_v46 = vmul.f32 0.25, %v846_v49  ;;  %v736_v9 = vsel %vm685_vm13, %v2992_v26, %v703_v5  ;;  %v874_v32 = vmul.f32 0.75, %v845_v15  ;;  %v2109_v57 = vunpack.c.l.bf16 %v2235_v34 }
 0x102   : > { %1061 = vadd.xlane.f32.xlu1 %v3091_v52  ;;  %v807_v42 = vmul.f32 0.25, %v736_v9  ;;  %v930_v30 = vmax.f32 %v908_v27, 0.0  ;;  %v2110_v19 = vunpack.c.h.bf16 %v2235_v34  ;;  %v3106_v12 = vmul.f32 0.25, %v826_v8 }
 0x103   : > { %v3109_v39 = vadd.f32 %v2824_v23, %v532_v47  ;;  %v929_v31 = vmax.f32 %v907_v48, 0.0  ;;  %vm746_vm14 = vcmp.eq.s32.totalorder %v605_v37, 7  ;;  %v3111_v21 = vadd.f32 %v2113_v29, %v931_v17  ;;  %v3137_v48 = vld [vmem:[%s2793_s11 + $0x48] sm:$0xff]  }
 0x104   : > { %v827_v16 = vadd.f32 %v817_v10, %v807_v42  ;;  %v910_v63 = vadd.f32 %v874_v32, %v3102_v46  ;;  %v763_v59 = vsel %vm760_vm0, %v756_v60, %v757_v53  ;;  %v696_v20 = vrot.slane %v3070_v44, 7 }
 0x105   : > { %v890_v15 = vadd.f32 %v874_v32, %v3008_v56  ;;  %v3121_v23 = vadd.f32 %v2110_v19, %v930_v30  ;;  %v909_v41 = vadd.f32 %v873_v62, %v3106_v12  ;;  %v797_v51 = vsel %vm746_vm14, %v2992_v26, %v763_v59 }
 0x106   : > { %v556_v45 = vadd.s32 56, %v2809_v14  ;;  %v758_v36 = vrot.slane %v3109_v39, 1  ;;  %v3128_v0 = vadd.f32 %v2109_v57, %v929_v31  ;;  %v3130_v60 = vmul.f32 0.25, %v827_v16 }
 0x107   : > { %v837_v29 = vmul.f32 0.25, %v797_v51  ;;  %v698_v56 = vrot.slane %v3014_v4, 7  ;;  %v934_v3 = vmax.f32 %v910_v63, 0.0  ;;  %v2118_v37 = vunpack.c.h.bf16 %v2237_v40 }
 0x108   : > { %v612_v5 = vand.u32 7, %v556_v45  ;;  %v2114_v62 = vunpack.c.h.bf16 %v3062_v22  ;;  %v2117_v47 = vunpack.c.l.bf16 %v2237_v40  ;;  %v875_v27 = vmul.f32 0.75, %v826_v8 }
 0x109   : > { %1071 = vadd.xlane.f32.xlu0 %v3111_v21  ;;  %1069 = vadd.xlane.f32.xlu2 %v3121_v23  ;;  %v876_v34 = vmul.f32 0.75, %v846_v49  ;;  %v932_v17 = vmax.f32 %v890_v15, 0.0  ;;  %v933_v9 = vmax.f32 %v909_v41, 0.0  ;;  %v702_v42 = vsel %vm699_vm1, %v695_v28, %v696_v20  ;;  %v2238_v15 = vld [vmem:[%s2793_s11 + $0x40] sm:$0xff]  }
 0x10a   : > { %1067 = vadd.xlane.f32.xlu1 %v3128_v0  ;;  %vm3139_vm15 = vcmp.eq.s32.totalorder %v612_v5, 0  ;;  %v697_v22 = vrot.slane %v3109_v39, 7  ;;  %v911_v8 = vadd.f32 %v875_v27, %v3130_v60  ;;  %v847_v57 = vadd.f32 %v837_v29, %v817_v10 }
 0x10b   : > { %v3151_v49 = vadd.f32 %v2118_v37, %v934_v3  ;;  %v2125_v30 = vunpack.c.l.bf16 %v3137_v48  ;;  %vm3154_vm2 = vcmp.eq.s32.totalorder %v612_v5, 7  ;;  %v762_v26 = vsel %vm760_vm0, %v757_v53, %v758_v36 }
 0x10c   : > { %v891_v28 = vadd.f32 %v875_v27, %v3072_v43  ;;  %v892_v31 = vadd.f32 %v876_v34, %v3081_v58  ;;  %v737_v10 = vsel %vm3139_vm15, %v3070_v44, %v702_v42  ;;  %vm679_vm3 = vcmp.eq.s32.totalorder %v563_v24, 0 }
 0x10d   : > { %v3170_v63 = vadd.f32 %v2114_v62, %v932_v17  ;;  %v3172_v59 = vadd.f32 %v2117_v47, %v933_v9  ;;  %v3175_v40 = vmul.f32 0.75, %v827_v16  ;;  %v709_v43 = vsel %vm699_vm1, %v698_v56, %v689_v54  ;;  %v2240_v62 = vld [vmem:[%s2793_s11 + $0x50] sm:$0xff]  }
 0x10e   : > { %v937_v58 = vmax.f32 %v911_v8, 0.0  ;;  %v3183_v53 = vmul.f32 0.75, %v847_v57  ;;  %v798_v24 = vsel %vm3154_vm2, %v3070_v44, %v762_v26  ;;  %v730_v41 = vsel %vm679_vm3, %v2838_v33, %v709_v43 }
 0x10f   : > { %v808_v16 = vmul.f32 0.25, %v737_v10  ;;  %v818_v51 = vmul.f32 0.75, %v3070_v44  ;;  %v801_v45 = vmul.f32 0.25, %v730_v41  ;;  %v557_v29 = vadd.s32 64, %v2809_v14 }
 0x110   : > { %v935_v54 = vmax.f32 %v891_v28, 0.0  ;;  %v2121_v3 = vunpack.c.l.bf16 %v2238_v15  ;;  %v936_v37 = vmax.f32 %v892_v31, 0.0  ;;  %v2122_v5 = vunpack.c.h.bf16 %v2238_v15 }
 0x111   : > { %1077 = vadd.xlane.f32.xlu0 %v3151_v49  ;;  %1075 = vadd.xlane.f32.xlu2 %v3172_v59  ;;  %v893_v47 = vadd.f32 %v3175_v40, %v3106_v12  ;;  %v838_v27 = vmul.f32 0.25, %v798_v24  ;;  %v821_v17 = vadd.f32 %v2919_v6, %v801_v45  ;;  %v619_v9 = vand.u32 7, %v557_v29 }
 0x112   : > { %1073 = vadd.xlane.f32.xlu1 %v3170_v63  ;;  %v759_v32 = vrot.slane %v3014_v4, 1  ;;  %v3198_v42 = vadd.f32 %v2125_v30, %v937_v58  ;;  %v894_v8 = vadd.f32 %v3183_v53, %v3102_v46  ;;  %v3202_v19 = vmul.f32 0.25, %v847_v57 }
 0x113   : > { %v828_v26 = vadd.f32 %v818_v51, %v808_v16  ;;  %v851_v28 = vmul.f32 0.25, %v821_v17  ;;  %vm3204_vm4 = vcmp.eq.s32.totalorder %v619_v9, 0  ;;  %v701_v6 = vsel %vm699_vm1, %v696_v20, %v697_v22 }
 0x114   : > { %v3214_v12 = vadd.f32 %v2121_v3, %v935_v54  ;;  %v3216_v30 = vadd.f32 %v2122_v5, %v936_v37  ;;  %v2130_v46 = vunpack.c.h.bf16 %v2240_v62  ;;  %v2129_v57 = vunpack.c.l.bf16 %v2240_v62 }
 0x115   : > { %v939_v10 = vmax.f32 %v893_v47, 0.0  ;;  %v848_v15 = vadd.f32 %v838_v27, %v818_v51  ;;  %v883_v43 = vadd.f32 %v2962_v2, %v851_v28  ;;  %v2089_v58 = vunpack.c.l.bf16 %v2849_v38 }
 0x116   : > { %v912_v24 = vadd.f32 %v876_v34, %v3202_v19  ;;  %v738_v44 = vsel %vm3204_vm4, %v3109_v39, %v701_v6  ;;  %vm748_vm5 = vcmp.eq.s32.totalorder %v619_v9, 7  ;;  %v761_v20 = vsel %vm760_vm0, %v758_v36, %v759_v32 }
 0x117   : > { %v940_v41 = vmax.f32 %v894_v8, 0.0  ;;  %v879_v16 = vmul.f32 0.75, %v828_v26  ;;  %v919_v51 = vmax.f32 %v883_v43, 0.0  ;;  %v799_v2 = vsel %vm748_vm5, %v3109_v39, %v761_v20  ;;  %v2242_v8 = vld [vmem:[%s2793_s11 + $0x60] sm:$0xff]  }
 0x118   : > { %v819_v38 = vmul.f32 0.75, %v3109_v39  ;;  %v839_v34 = vmul.f32 0.25, %v799_v2  ;;  %v558_v45 = vadd.s32 72, %v2809_v14  ;;  %v866_v29 = vmul.f32 0.25, %v848_v15 }
 0x119   : > { %1083 = vadd.xlane.f32.xlu0 %v3198_v42  ;;  %1081 = vadd.xlane.f32.xlu2 %v3216_v30  ;;  %v3234_v54 = vadd.f32 %v2089_v58, %v919_v51  ;;  %v809_v3 = vmul.f32 0.25, %v738_v44  ;;  %v700_v36 = vsel %vm699_vm1, %v697_v22, %v698_v56  ;;  %v938_v37 = vmax.f32 %v912_v24, 0.0 }
 0x11a   : > { %1079 = vadd.xlane.f32.xlu1 %v3214_v12  ;;  %v2126_v5 = vunpack.c.h.bf16 %v3137_v48  ;;  %v865_v62 = vmul.f32 0.25, %v828_v26  ;;  %v626_v47 = vand.u32 7, %v558_v45  ;;  %v3243_v27 = vadd.f32 %v2130_v46, %v940_v41  ;;  %v2241_v48 = vld [vmem:[%s2793_s11 + $0x58] sm:$0xff]  }
 0x11b   : > { %v3245_v17 = vadd.f32 %v2129_v57, %v939_v10  ;;  %v895_v9 = vadd.f32 %v879_v16, %v3130_v60  ;;  %v770_v39 = vsel %vm760_vm0, %v759_v32, %v750_v55  ;;  %v849_v28 = vadd.f32 %v839_v34, %v819_v38 }
 0x11c   : > { %vm688_vm6 = vcmp.eq.s32.totalorder %v626_v47, 0  ;;  %v820_v56 = vmul.f32 0.75, %v3014_v4  ;;  %vm749_vm1 = vcmp.eq.s32.totalorder %v626_v47, 7  ;;  %v914_v22 = vadd.f32 %v3183_v53, %v866_v29 }
 0x11d   : > { %v829_v26 = vadd.f32 %v819_v38, %v809_v3  ;;  %v739_v31 = vsel %vm688_vm6, %v3014_v4, %v700_v36  ;;  %v800_v60 = vsel %vm749_vm1, %v3014_v4, %v770_v39  ;;  %v3259_v33 = vadd.f32 %v2126_v5, %v938_v37 }
 0x11e   : > { %v913_v14 = vadd.f32 %v3175_v40, %v865_v62  ;;  %v810_v55 = vmul.f32 0.25, %v739_v31  ;;  %v840_v32 = vmul.f32 0.25, %v800_v60  ;;  %v943_v6 = vmax.f32 %v895_v9, 0.0  ;;  %v2244_v31 = vld [vmem:[%s2793_s11 + $0x70] sm:$0xff]  }
 0x11f   : > { %v2137_v46 = vunpack.c.l.bf16 %v2242_v8  ;;  %v2133_v57 = vunpack.c.l.bf16 %v2241_v48  ;;  %v882_v10 = vmul.f32 0.75, %v849_v28  ;;  %v942_v58 = vmax.f32 %v914_v22, 0.0 }
 0x120   : > { %v830_v53 = vadd.f32 %v820_v56, %v810_v55  ;;  %v850_v43 = vadd.f32 %v840_v32, %v820_v56  ;;  %v2134_v24 = vunpack.c.h.bf16 %v2241_v48  ;;  %v880_v4 = vmul.f32 0.75, %v848_v15  ;;  %v2243_v15 = vld [vmem:[%s2793_s11 + $0x68] sm:$0xff]  }
 0x121   : > { %1089 = vadd.xlane.f32.xlu0 %v3243_v27  ;;  %1087 = vadd.xlane.f32.xlu2 %v3245_v17  ;;  %v899_v44 = vmul.f32 0.25, %v829_v26  ;;  %v941_v20 = vmax.f32 %v913_v14, 0.0  ;;  %v881_v41 = vmul.f32 0.75, %v829_v26  ;;  %v3264_v2 = vadd.f32 %v2137_v46, %v943_v6 }
 0x122   : > { %1085 = vadd.xlane.f32.xlu1 %v3259_v33  ;;  %v901_v40 = vmul.f32 0.25, %v830_v53  ;;  %v902_v51 = vmul.f32 0.25, %v850_v43  ;;  %v3267_v45 = vadd.f32 %v2134_v24, %v942_v58  ;;  %v896_v37 = vadd.f32 %v880_v4, %v3202_v19 }
 0x123   : > { %v915_v3 = vadd.f32 %v899_v44, %v879_v16  ;;  %v3269_v36 = vadd.f32 %v2133_v57, %v941_v20  ;;  %v900_v5 = vmul.f32 0.25, %v849_v28  ;;  %v2141_v9 = vunpack.c.l.bf16 %v2243_v15 }
 0x124   : > { %v917_v38 = vadd.f32 %v901_v40, %v881_v41  ;;  %v918_v34 = vadd.f32 %v902_v51, %v882_v10  ;;  %v944_v39 = vmax.f32 %v896_v37, 0.0  ;;  %v2138_v56 = vunpack.c.h.bf16 %v2242_v8 }
 0x125   : > { %v945_v47 = vmax.f32 %v915_v3, 0.0  ;;  %v916_v48 = vadd.f32 %v900_v5, %v880_v4  ;;  %v898_v16 = vadd.f32 %v882_v10, %v866_v29  ;;  %v897_v19 = vadd.f32 %v881_v41, %v865_v62  ;;  %v2245_v62 = vld [vmem:[%s2793_s11 + $0x78] sm:$0xff]   ;;  %s2544_s11 = sshra.s32 %s1879_s19, 4  ;;  %s2545_s11 = int_to_ptr.hbm [resolvable:$true] %s2544_s11 }
 0x126   : > { %v3278_v26 = vadd.f32 %v2138_v56, %v944_v39  ;;  %v2142_v60 = vunpack.c.h.bf16 %v2243_v15  ;;  %v2146_v55 = vunpack.c.h.bf16 %v2244_v31  ;;  %v2145_v32 = vunpack.c.l.bf16 %v2244_v31  ;;  %s2546_s30 = scalar_lea.hbm %s2545_s11, 128  ;;  %p2551_p8 = scmp.lt.s32.totalorder %s2545_s11, %s4015_s7 }
 0x127   : > { %v3276_v22 = vadd.f32 %v2141_v9, %v945_v47  ;;  %v946_v28 = vmax.f32 %v916_v48, 0.0  ;;  %v948_v14 = vmax.f32 %v898_v16, 0.0  ;;  %v947_v8 = vmax.f32 %v897_v19, 0.0  ;;  %p2547_p1 = scmp.ne.s32.totalorder %s2545_s11, %s2546_s30  ;;  %p2552_p12 = scmp.lt.s32.totalorder %s2550_s16, %s2546_s30 }
 0x128   : > { %v949_v57 = vmax.f32 %v917_v38, 0.0  ;;  %v2149_v10 = vunpack.c.l.bf16 %v2245_v62  ;;  %v950_v53 = vmax.f32 %v918_v34, 0.0  ;;  %v2150_v43 = vunpack.c.h.bf16 %v2245_v62 }
 0x129   : > { %1095 = vadd.xlane.f32.xlu0 %v3264_v2  ;;  %1093 = vadd.xlane.f32.xlu2 %v3267_v45  ;;  %v3283_v6 = vadd.f32 %v2142_v60, %v946_v28  ;;  %v3286_v29 = vadd.f32 %v2146_v55, %v948_v14  ;;  %v3288_v46 = vadd.f32 %v2145_v32, %v947_v8  ;;  %v1144_v4 = vand.u32 127, %v548_v13  ;;  %p2548_p2 = pnand %p2547_p1, %p2742_p5  ;;  %p2553_p13 = por %p2552_p12, %p2551_p8 }
 0x12a   : > { %1091 = vadd.xlane.f32.xlu1 %v3269_v36  ;;  %v3293_v58 = vadd.f32 %v2149_v10, %v949_v57  ;;  %v3296_v24 = vadd.f32 %v2150_v43, %v950_v53  ;;  %v2625_v41 = vmov 0.0  }
 0x12b   : > { %vm1145_vm0 = vcmp.lt.s32.totalorder %v1144_v4, 8  ;;  %p2549_p4 = pneg %p2548_p2 }
 0x12c   : > { %v3300_v40 = vsel %vm1145_vm0, 1.0, %v2625_v41 }
 0x12d   : > { %p2554_p0 = pnand %p2553_p13, %p2549_p4 }
 0x131   : > { %1047 = vadd.xlane.f32.xlu0 %v3234_v54  ;;  %1099 = vadd.xlane.f32.xlu2 %v3276_v22 }
 0x132   : > { %1097 = vadd.xlane.f32.xlu1 %v3278_v26 }
 0x139   : > { %1101 = vadd.xlane.f32.xlu0 %v3283_v6  ;;  %1105 = vadd.xlane.f32.xlu2 %v3286_v29 }
 0x13a   : > { %1103 = vadd.xlane.f32.xlu1 %v3288_v46 }
 0x141   : > { %1107 = vadd.xlane.f32.xlu0 %v3293_v58 }
 0x142   : > { %1109 = vadd.xlane.f32.xlu1 %v3296_v24 }
 0x164   : > { %v1050_v44 = vpop.xlane.xlu0 %1049  ;;  %v1056_v51 = vpop.xlane.xlu2 %1055 }
 0x165   : > { %v1112_v20 = vmul.f32 0.125, %v1050_v44  ;;  %v1115_v34 = vmul.f32 0.125, %v1056_v51  ;;  %v1052_v3 = vpop.xlane.xlu1 %1051 }
 0x166   : > { %v1113_v37 = vmul.f32 0.125, %v1052_v3 }
 0x167   : > { %v1149_v38 = vsub.f32 %v2976_v11, %v1112_v20  ;;  %v1152_v47 = vsub.f32 %v2989_v50, %v1115_v34 }
 0x168   : > { %v1150_v5 = vsub.f32 %v2996_v35, %v1113_v37 }
 0x169   : > { %v3304_v15 = vmul.f32 %v3300_v40, %v1149_v38  ;;  %v3316_v19 = vmul.f32 %v3300_v40, %v1152_v47 }
 0x16a   : > { %v3311_v39 = vmul.f32 %v3300_v40, %v1150_v5 }
 0x16b   : > { %v1213_v13 = vmul.f32 %v3304_v15, %v3304_v15  ;;  %v1216_v60 = vmul.f32 %v3316_v19, %v3316_v19 }
 0x16c   : > { %v1060_v9 = vpop.xlane.xlu0 %1059  ;;  %v1058_v56 = vpop.xlane.xlu2 %1057  ;;  %v1214_v11 = vmul.f32 %v3311_v39, %v3311_v39 }
 0x16d   : > { %1246 = vadd.xlane.f32.xlu0 %v1213_v13  ;;  %v1116_v48 = vmul.f32 0.125, %v1058_v56  ;;  %v1054_v16 = vpop.xlane.xlu1 %1053  ;;  %v1117_v31 = vmul.f32 0.125, %v1060_v9 }
 0x16e   : > { %v1114_v35 = vmul.f32 0.125, %v1054_v16  ;;  %1248 = vadd.xlane.f32.xlu1 %v1214_v11 }
 0x16f   : > { %v1153_v50 = vsub.f32 %v3036_v18, %v1116_v48  ;;  %v1154_v62 = vsub.f32 %v3026_v7, %v1117_v31 }
 0x170   : > { %v1151_v28 = vsub.f32 %v3048_v1, %v1114_v35 }
 0x171   : > { %v3323_v14 = vmul.f32 %v3300_v40, %v1153_v50  ;;  %v3336_v20 = vmul.f32 %v3300_v40, %v1154_v62 }
 0x172   : > { %v3326_v8 = vmul.f32 %v3300_v40, %v1151_v28 }
 0x173   : > { %v1217_v32 = vmul.f32 %v3323_v14, %v3323_v14 }
 0x174   : > { %v1066_v55 = vpop.xlane.xlu0 %1065  ;;  %v1064_v18 = vpop.xlane.xlu2 %1063  ;;  %v1215_v1 = vmul.f32 %v3326_v8, %v3326_v8 }
 0x175   : > { %1252 = vadd.xlane.f32.xlu0 %v1216_v60  ;;  %v1062_v57 = vpop.xlane.xlu1 %1061  ;;  %v1119_v10 = vmul.f32 0.125, %v1064_v18  ;;  %v1120_v4 = vmul.f32 0.125, %v1066_v55 }
 0x176   : > { %v1118_v53 = vmul.f32 0.125, %v1062_v57  ;;  %1254 = vadd.xlane.f32.xlu1 %v1217_v32  ;;  %1250 = vadd.xlane.f32.xlu2 %v1215_v1 }
 0x177   : > { %v1156_v43 = vsub.f32 %v3093_v25, %v1119_v10  ;;  %v1157_v34 = vsub.f32 %v3078_v61, %v1120_v4 }
 0x178   : > { %v1155_v44 = vsub.f32 %v3091_v52, %v1118_v53  ;;  %v1218_v52 = vmul.f32 %v3336_v20, %v3336_v20 }
 0x179   : > { %v3339_v41 = vmul.f32 %v3300_v40, %v1156_v43  ;;  %v3354_v61 = vmul.f32 %v3300_v40, %v1157_v34 }
 0x17a   : > { %v3342_v51 = vmul.f32 %v3300_v40, %v1155_v44 }
 0x17b   : > { %v1220_v38 = vmul.f32 %v3339_v41, %v3339_v41 }
 0x17c   : > { %v1072_v7 = vpop.xlane.xlu0 %1071  ;;  %v1070_v3 = vpop.xlane.xlu2 %1069  ;;  %v1219_v25 = vmul.f32 %v3342_v51, %v3342_v51 }
 0x17d   : > { %v1068_v37 = vpop.xlane.xlu1 %1067  ;;  %v1122_v5 = vmul.f32 0.125, %v1070_v3  ;;  %v1123_v9 = vmul.f32 0.125, %v1072_v7 }
 0x17e   : > { %v1121_v47 = vmul.f32 0.125, %v1068_v37  ;;  %1258 = vadd.xlane.f32.xlu0 %v1219_v25  ;;  %1256 = vadd.xlane.f32.xlu2 %v1218_v52 }
 0x17f   : > { %v1159_v13 = vsub.f32 %v3121_v23, %v1122_v5  ;;  %1260 = vadd.xlane.f32.xlu1 %v1220_v38  ;;  %v1160_v50 = vsub.f32 %v3111_v21, %v1123_v9 }
 0x180   : > { %v1158_v56 = vsub.f32 %v3128_v0, %v1121_v47  ;;  %v1221_v0 = vmul.f32 %v3354_v61, %v3354_v61 }
 0x181   : > { %v3357_v11 = vmul.f32 %v3300_v40, %v1159_v13  ;;  %v3372_v21 = vmul.f32 %v3300_v40, %v1160_v50 }
 0x182   : > { %v3360_v16 = vmul.f32 %v3300_v40, %v1158_v56 }
 0x183   : > { %v1223_v35 = vmul.f32 %v3357_v11, %v3357_v11 }
 0x184   : > { %v1078_v48 = vpop.xlane.xlu0 %1077  ;;  %v1076_v23 = vpop.xlane.xlu2 %1075  ;;  %v1222_v31 = vmul.f32 %v3360_v16, %v3360_v16 }
 0x185   : > { %v1074_v28 = vpop.xlane.xlu1 %1073  ;;  %v1125_v60 = vmul.f32 0.125, %v1076_v23  ;;  %v1126_v62 = vmul.f32 0.125, %v1078_v48 }
 0x186   : > { %v1124_v55 = vmul.f32 0.125, %v1074_v28  ;;  %1264 = vadd.xlane.f32.xlu0 %v1222_v31  ;;  %1262 = vadd.xlane.f32.xlu2 %v1221_v0 }
 0x187   : > { %v1162_v32 = vsub.f32 %v3172_v59, %v1125_v60  ;;  %1266 = vadd.xlane.f32.xlu1 %v1223_v35  ;;  %v1163_v43 = vsub.f32 %v3151_v49, %v1126_v62 }
 0x188   : > { %v1161_v18 = vsub.f32 %v3170_v63, %v1124_v55  ;;  %v1224_v63 = vmul.f32 %v3372_v21, %v3372_v21 }
 0x189   : > { %v3375_v1 = vmul.f32 %v3300_v40, %v1162_v32  ;;  %v3390_v49 = vmul.f32 %v3300_v40, %v1163_v43 }
 0x18a   : > { %v3378_v10 = vmul.f32 %v3300_v40, %v1161_v18 }
 0x18b   : > { %v1226_v53 = vmul.f32 %v3375_v1, %v3375_v1 }
 0x18c   : > { %v1084_v57 = vpop.xlane.xlu0 %1083  ;;  %v1082_v59 = vpop.xlane.xlu2 %1081  ;;  %v1225_v4 = vmul.f32 %v3378_v10, %v3378_v10 }
 0x18d   : > { %v1080_v44 = vpop.xlane.xlu1 %1079  ;;  %v1128_v7 = vmul.f32 0.125, %v1082_v59  ;;  %v1129_v3 = vmul.f32 0.125, %v1084_v57 }
 0x18e   : > { %v1127_v38 = vmul.f32 0.125, %v1080_v44  ;;  %1270 = vadd.xlane.f32.xlu0 %v1225_v4  ;;  %1268 = vadd.xlane.f32.xlu2 %v1224_v63 }
 0x18f   : > { %v1165_v34 = vsub.f32 %v3216_v30, %v1128_v7  ;;  %1272 = vadd.xlane.f32.xlu1 %v1226_v53  ;;  %v1166_v13 = vsub.f32 %v3198_v42, %v1129_v3 }
 0x190   : > { %v1164_v25 = vsub.f32 %v3214_v12, %v1127_v38  ;;  %v1227_v12 = vmul.f32 %v3390_v49, %v3390_v49 }
 0x191   : > { %v3393_v52 = vmul.f32 %v3300_v40, %v1165_v34  ;;  %v3408_v42 = vmul.f32 %v3300_v40, %v1166_v13 }
 0x192   : > { %v3396_v5 = vmul.f32 %v3300_v40, %v1164_v25 }
 0x193   : > { %v1229_v47 = vmul.f32 %v3393_v52, %v3393_v52 }
 0x194   : > { %v1090_v37 = vpop.xlane.xlu0 %1089  ;;  %v1088_v30 = vpop.xlane.xlu2 %1087  ;;  %v1228_v9 = vmul.f32 %v3396_v5, %v3396_v5 }
 0x195   : > { %v1086_v56 = vpop.xlane.xlu1 %1085  ;;  %v1131_v48 = vmul.f32 0.125, %v1088_v30  ;;  %v1132_v23 = vmul.f32 0.125, %v1090_v37 }
 0x196   : > { %v1130_v35 = vmul.f32 0.125, %v1086_v56  ;;  %1276 = vadd.xlane.f32.xlu0 %v1228_v9  ;;  %1274 = vadd.xlane.f32.xlu2 %v1227_v12 }
 0x197   : > { %v1168_v50 = vsub.f32 %v3245_v17, %v1131_v48  ;;  %1278 = vadd.xlane.f32.xlu1 %v1229_v47  ;;  %v1169_v32 = vsub.f32 %v3243_v27, %v1132_v23 }
 0x198   : > { %v1167_v31 = vsub.f32 %v3259_v33, %v1130_v35  ;;  %v1230_v33 = vmul.f32 %v3408_v42, %v3408_v42 }
 0x199   : > { %v3411_v0 = vmul.f32 %v3300_v40, %v1168_v50  ;;  %v3426_v27 = vmul.f32 %v3300_v40, %v1169_v32 }
 0x19a   : > { %v3414_v60 = vmul.f32 %v3300_v40, %v1167_v31 }
 0x19b   : > { %v1232_v55 = vmul.f32 %v3411_v0, %v3411_v0 }
 0x19c   : > { %v1096_v28 = vpop.xlane.xlu0 %1095  ;;  %v1094_v17 = vpop.xlane.xlu2 %1093  ;;  %v1231_v62 = vmul.f32 %v3414_v60, %v3414_v60 }
 0x19d   : > { %v1092_v18 = vpop.xlane.xlu1 %1091  ;;  %v1134_v57 = vmul.f32 0.125, %v1094_v17  ;;  %v1135_v59 = vmul.f32 0.125, %v1096_v28 }
 0x19e   : > { %v1133_v53 = vmul.f32 0.125, %v1092_v18  ;;  %1282 = vadd.xlane.f32.xlu0 %v1231_v62  ;;  %1280 = vadd.xlane.f32.xlu2 %v1230_v33 }
 0x19f   : > { %v1171_v43 = vsub.f32 %v3267_v45, %v1134_v57  ;;  %1284 = vadd.xlane.f32.xlu1 %v1232_v55  ;;  %v1172_v34 = vsub.f32 %v3264_v2, %v1135_v59 }
 0x1a0   : > { %v1170_v4 = vsub.f32 %v3269_v36, %v1133_v53  ;;  %v1233_v36 = vmul.f32 %v3426_v27, %v3426_v27 }
 0x1a1   : > { %v3429_v63 = vmul.f32 %v3300_v40, %v1171_v43  ;;  %v3444_v2 = vmul.f32 %v3300_v40, %v1172_v34 }
 0x1a2   : > { %v3432_v7 = vmul.f32 %v3300_v40, %v1170_v4 }
 0x1a3   : > { %v1235_v38 = vmul.f32 %v3429_v63, %v3429_v63 }
 0x1a4   : > { %v1048_v44 = vpop.xlane.xlu0 %1047  ;;  %v1100_v45 = vpop.xlane.xlu2 %1099  ;;  %v1234_v3 = vmul.f32 %v3432_v7, %v3432_v7 }
 0x1a5   : > { %v1098_v25 = vpop.xlane.xlu1 %1097  ;;  %v1137_v37 = vmul.f32 0.125, %v1100_v45  ;;  %v1111_v30 = vmul.f32 0.125, %v1048_v44 }
 0x1a6   : > { %v1136_v47 = vmul.f32 0.125, %v1098_v25  ;;  %1288 = vadd.xlane.f32.xlu0 %v1234_v3  ;;  %1286 = vadd.xlane.f32.xlu2 %v1233_v36 }
 0x1a7   : > { %v1174_v13 = vsub.f32 %v3276_v22, %v1137_v37  ;;  %1290 = vadd.xlane.f32.xlu1 %v1235_v38  ;;  %v1148_v50 = vsub.f32 %v3234_v54, %v1111_v30 }
 0x1a8   : > { %v1173_v9 = vsub.f32 %v3278_v26, %v1136_v47  ;;  %v1236_v26 = vmul.f32 %v3444_v2, %v3444_v2 }
 0x1a9   : > { %v3447_v12 = vmul.f32 %v3300_v40, %v1174_v13  ;;  %v3462_v54 = vmul.f32 %v3300_v40, %v1148_v50 }
 0x1aa   : > { %v3450_v56 = vmul.f32 %v3300_v40, %v1173_v9 }
 0x1ab   : > { %v1238_v35 = vmul.f32 %v3447_v12, %v3447_v12 }
 0x1ac   : > { %v1102_v48 = vpop.xlane.xlu0 %1101  ;;  %v1106_v22 = vpop.xlane.xlu2 %1105  ;;  %v1237_v23 = vmul.f32 %v3450_v56, %v3450_v56 }
 0x1ad   : > { %v1104_v31 = vpop.xlane.xlu1 %1103  ;;  %v1140_v28 = vmul.f32 0.125, %v1106_v22  ;;  %v1138_v17 = vmul.f32 0.125, %v1102_v48 }
 0x1ae   : > { %v1139_v55 = vmul.f32 0.125, %v1104_v31  ;;  %1294 = vadd.xlane.f32.xlu0 %v1237_v23  ;;  %1292 = vadd.xlane.f32.xlu2 %v1236_v26 }
 0x1af   : > { %v1177_v32 = vsub.f32 %v3286_v29, %v1140_v28  ;;  %1296 = vadd.xlane.f32.xlu1 %v1238_v35  ;;  %v1175_v53 = vsub.f32 %v3283_v6, %v1138_v17 }
 0x1b0   : > { %v1176_v62 = vsub.f32 %v3288_v46, %v1139_v55  ;;  %v1212_v46 = vmul.f32 %v3462_v54, %v3462_v54 }
 0x1b1   : > { %v3465_v33 = vmul.f32 %v3300_v40, %v1177_v32  ;;  %v3479_v34 = vmul.f32 %v3300_v40, %v1175_v53 }
 0x1b2   : > { %v3468_v18 = vmul.f32 %v3300_v40, %v1176_v62 }
 0x1b3   : > { %v1241_v57 = vmul.f32 %v3465_v33, %v3465_v33  ;;  %v1239_v36 = vmul.f32 %v3479_v34, %v3479_v34 }
 0x1b4   : > { %v1240_v29 = vmul.f32 %v3468_v18, %v3468_v18  ;;  %v1108_v43 = vpop.xlane.xlu0 %1107 }
 0x1b5   : > { %v1110_v59 = vpop.xlane.xlu1 %1109  ;;  %v1141_v44 = vmul.f32 0.125, %v1108_v43 }
 0x1b6   : > { %v1142_v4 = vmul.f32 0.125, %v1110_v59  ;;  %1300 = vadd.xlane.f32.xlu0 %v1240_v29  ;;  %1244 = vadd.xlane.f32.xlu2 %v1212_v46 }
 0x1b7   : > { %1302 = vadd.xlane.f32.xlu1 %v1241_v57  ;;  %v1178_v45 = vsub.f32 %v3293_v58, %v1141_v44 }
 0x1b8   : > { %v1179_v38 = vsub.f32 %v3296_v24, %v1142_v4 }
 0x1b9   : > { %v3490_v25 = vmul.f32 %v3300_v40, %v1178_v45 }
 0x1ba   : > { %v3482_v6 = vmul.f32 %v3300_v40, %v1179_v38 }
 0x1bb   : > { %v1242_v24 = vmul.f32 %v3490_v25, %v3490_v25 }
 0x1bc   : > { %v1243_v3 = vmul.f32 %v3482_v6, %v3482_v6 }
 0x1be   : > { %1306 = vadd.xlane.f32.xlu0 %v1243_v3  ;;  %1298 = vadd.xlane.f32.xlu2 %v1239_v36 }
 0x1c6   : > { %1304 = vadd.xlane.f32.xlu2 %v1242_v24 }
 0x1e0   : > { %v1247_v37 = vpop.xlane.xlu0 %1246 }
 0x1e1   : > { %v1249_v47 = vpop.xlane.xlu1 %1248 }
 0x1e2   : > { %v1310_v13 = vmul.f32 0.125, %v1249_v47 }
 0x1e4   : > { %v1342_v30 = vadd.f32 1e-05, %v1310_v13 }
 0x1e6   : > { %2375 = vrsqrt.f32 %v1342_v30  ;;  %vm1398_vm8 = vweird.f32 %v1342_v30 }
 0x1e8   : > { %v1253_v58 = vpop.xlane.xlu0 %1252 }
 0x1e9   : > { %v1312_v9 = vmul.f32 0.125, %v1253_v58  ;;  %v1255_v35 = vpop.xlane.xlu1 %1254  ;;  %v1251_v50 = vpop.xlane.xlu2 %1250 }
 0x1ea   : > { %v1313_v22 = vmul.f32 0.125, %v1255_v35  ;;  %v1311_v23 = vmul.f32 0.125, %v1251_v50 }
 0x1eb   : > { %v1344_v48 = vadd.f32 1e-05, %v1312_v9 }
 0x1ec   : > { %v2376_v26 = vpop.eup %2375  ;;  %v1345_v40 = vadd.f32 1e-05, %v1313_v22  ;;  %v3494_v31 = vadd.f32 1e-05, %v1311_v23  ;;  %v3506_v23 = vld [vmem:[%s4013_s5] ss:$0 sm:$0xff] }
 0x1ed   : > { %2377 = vrsqrt.f32 %v1344_v48  ;;  %v1393_v28 = vmul.f32 %v2376_v26, %v1342_v30  ;;  %vm1399_vm7 = vweird.f32 %v2376_v26  ;;  %v3508_v30 = vmul.f32 0.125, %v1247_v37 }
 0x1ee   : > { %2379 = vrsqrt.f32 %v1345_v40  ;;  %vm1400_vm9 = vmor %vm1398_vm8, %vm1399_vm7  ;;  %vm1418_vm11 = vweird.f32 %v1344_v48  ;;  %vm1428_vm13 = vweird.f32 %v1345_v40  ;;  %vm1408_vm3 = vweird.f32 %v3494_v31 }
 0x1ef   : > { %v1394_v55 = vmul.f32 %v2376_v26, %v1393_v28  ;;  %2381 = vrsqrt.f32 %v3494_v31 }
 0x1f1   : > { %v1395_v17 = vmul.f32 0.5, %v1394_v55  ;;  %v1259_v62 = vpop.xlane.xlu0 %1258  ;;  %v1257_v46 = vpop.xlane.xlu2 %1256 }
 0x1f2   : > { %v1315_v53 = vmul.f32 0.125, %v1259_v62  ;;  %v1261_v29 = vpop.xlane.xlu1 %1260  ;;  %v1314_v24 = vmul.f32 0.125, %v1257_v46 }
 0x1f3   : > { %v2378_v32 = vpop.eup %2377  ;;  %v1396_v43 = vsub.f32 1.5, %v1395_v17  ;;  %v1316_v38 = vmul.f32 0.125, %v1261_v29 }
 0x1f4   : > { %v1413_v57 = vmul.f32 %v2378_v32, %v1344_v48  ;;  %v2380_v59 = vpop.eup %2379  ;;  %v3497_v44 = vadd.f32 1e-05, %v1315_v53  ;;  %vm1419_vm10 = vweird.f32 %v2378_v32  ;;  %v3511_v17 = vadd.f32 1e-05, %v1314_v24  ;;  %v3520_v48 = vld [vmem:[%s4014_s6] ss:$0 sm:$0xff] }
 0x1f5   : > { %v2382_v45 = vpop.eup %2381  ;;  %v1397_v3 = vmul.f32 %v2376_v26, %v1396_v43  ;;  %v1423_v36 = vmul.f32 %v2380_v59, %v1345_v40  ;;  %v3501_v22 = vadd.f32 1e-05, %v1316_v38  ;;  %vm1420_vm12 = vmor %vm1418_vm11, %vm1419_vm10  ;;  %vm1429_vm14 = vweird.f32 %v2380_v59 }
 0x1f6   : > { %v1414_v4 = vmul.f32 %v2378_v32, %v1413_v57  ;;  %v1403_v13 = vmul.f32 %v2382_v45, %v3494_v31  ;;  %2383 = vrsqrt.f32 %v3497_v44  ;;  %vm1409_vm15 = vweird.f32 %v2382_v45  ;;  %vm1430_vm2 = vmor %vm1428_vm13, %vm1429_vm14 }
 0x1f7   : > { %v1401_v58 = vsel %vm1400_vm9, %v2376_v26, %v1397_v3  ;;  %v1424_v9 = vmul.f32 %v2380_v59, %v1423_v36  ;;  %2385 = vrsqrt.f32 %v3501_v22  ;;  %vm1448_vm4 = vweird.f32 %v3497_v44  ;;  %vm1410_vm5 = vmor %vm1408_vm3, %vm1409_vm15 }
 0x1f8   : > { %v1415_v47 = vmul.f32 0.5, %v1414_v4  ;;  %v1404_v50 = vmul.f32 %v2382_v45, %v1403_v13  ;;  %v1694_v28 = vmul.f32 %v1401_v58, %v3311_v39  ;;  %2387 = vrsqrt.f32 %v3511_v17 }
 0x1f9   : > { %v1425_v55 = vmul.f32 0.5, %v1424_v9  ;;  %v1265_v62 = vpop.xlane.xlu0 %1264  ;;  %v1263_v24 = vpop.xlane.xlu2 %1262  ;;  %vm1458_vm8 = vweird.f32 %v3501_v22  ;;  %vm1438_vm10 = vweird.f32 %v3511_v17 }
 0x1fa   : > { %v1416_v35 = vsub.f32 1.5, %v1415_v47  ;;  %v1405_v57 = vmul.f32 0.5, %v1404_v50  ;;  %v1318_v39 = vmul.f32 0.125, %v1265_v62  ;;  %v1267_v43 = vpop.xlane.xlu1 %1266  ;;  %v1730_v4 = vmul.f32 %v3506_v23, %v1694_v28 }
 0x1fb   : > { %v1426_v53 = vsub.f32 1.5, %v1425_v55  ;;  %v1319_v9 = vmul.f32 0.125, %v1267_v43  ;;  %v1317_v31 = vmul.f32 0.125, %v1263_v24 }
 0x1fc   : > { %v1417_v26 = vmul.f32 %v2378_v32, %v1416_v35  ;;  %v3515_v29 = vpop.eup %2383  ;;  %v1406_v46 = vsub.f32 1.5, %v1405_v57  ;;  %v3529_v47 = vadd.f32 1e-05, %v1318_v39  ;;  %v1766_v55 = vadd.f32 %v3520_v48, %v1730_v4 }
 0x1fd   : > { %v1427_v3 = vmul.f32 %v2380_v59, %v1426_v53  ;;  %v1443_v36 = vmul.f32 %v3515_v29, %v3497_v44  ;;  %v3534_v35 = vpop.eup %2385  ;;  %vm1449_vm6 = vweird.f32 %v3515_v29  ;;  %v3548_v43 = vadd.f32 1e-05, %v1319_v9 }
 0x1fe   : > { %v1421_v37 = vsel %vm1420_vm12, %v2378_v32, %v1417_v26  ;;  %v1407_v32 = vmul.f32 %v2382_v45, %v1406_v46  ;;  %2389 = vrsqrt.f32 %v3529_v47  ;;  %v2388_v28 = vpop.eup %2387  ;;  %vm1450_vm1 = vmor %vm1448_vm4, %vm1449_vm6  ;;  %vm1459_vm0 = vweird.f32 %v3534_v35 }
 0x1ff   : > { %v1696_v38 = vmul.f32 %v1421_v37, %v3316_v19  ;;  %v1431_v58 = vsel %vm1430_vm2, %v2380_v59, %v1427_v3  ;;  %v1444_v19 = vmul.f32 %v3515_v29, %v1443_v36  ;;  %v1453_v59 = vmul.f32 %v3534_v35, %v3501_v22  ;;  %vm3585_vm9 = vmor %vm1458_vm8, %vm1459_vm0 }
 0x200   : > { %v1697_v40 = vmul.f32 %v1431_v58, %v3323_v14  ;;  %v1411_v50 = vsel %vm1410_vm5, %v2382_v45, %v1407_v32  ;;  %v1433_v14 = vmul.f32 %v2388_v28, %v3511_v17  ;;  %2391 = vrsqrt.f32 %v3548_v43 }
 0x201   : > { %v1732_v13 = vmul.f32 %v3506_v23, %v1696_v38  ;;  %v1695_v62 = vmul.f32 %v1411_v50, %v3326_v8  ;;  %v1445_v26 = vmul.f32 0.5, %v1444_v19  ;;  %v1271_v57 = vpop.xlane.xlu0 %1270  ;;  %v1454_v39 = vmul.f32 %v3534_v35, %v1453_v59  ;;  %v1269_v9 = vpop.xlane.xlu2 %1268 }
 0x202   : > { %v1733_v37 = vmul.f32 %v3506_v23, %v1697_v40  ;;  %v1434_v4 = vmul.f32 %v2388_v28, %v1433_v14  ;;  %v3551_v38 = vadd.f32 1e-05, %v1317_v31  ;;  %v1321_v3 = vmul.f32 0.125, %v1271_v57 }
 0x203   : > { %v1768_v53 = vadd.f32 %v3520_v48, %v1732_v13  ;;  %v1731_v45 = vmul.f32 %v3506_v23, %v1695_v62  ;;  %v1446_v46 = vsub.f32 1.5, %v1445_v26  ;;  %v1455_v32 = vmul.f32 0.5, %v1454_v39  ;;  %v1273_v26 = vpop.xlane.xlu1 %1272 }
 0x204   : > { %v1769_v8 = vadd.f32 %v3520_v48, %v1733_v37  ;;  %v3556_v13 = vpop.eup %2389  ;;  %v1435_v19 = vmul.f32 0.5, %v1434_v4  ;;  %2393 = vrsqrt.f32 %v3551_v38  ;;  %v3568_v59 = vadd.f32 1e-05, %v3508_v30 }
 0x205   : > { %v1767_v36 = vadd.f32 %v3520_v48, %v1731_v45  ;;  %v1447_v24 = vmul.f32 %v3515_v29, %v1446_v46  ;;  %v1456_v31 = vsub.f32 1.5, %v1455_v32  ;;  %v1473_v62 = vmul.f32 %v3556_v13, %v3529_v47 }
 0x206   : > { %v2164_v58 = vpack.c.bf16 %v1769_v8, %v1768_v53  ;;  %v1436_v57 = vsub.f32 1.5, %v1435_v19  ;;  %vm1439_vm7 = vweird.f32 %v2388_v28  ;;  %v3580_v53 = vadd.f32 1e-05, %v1321_v3  ;;  %v3590_v45 = vpop.eup %2391 }
 0x207   : > { %v2159_v40 = vpack.c.bf16 %v1767_v36, %v1766_v55  ;;  %v1451_v50 = vsel %vm1450_vm1, %v3515_v29, %v1447_v24  ;;  %v1457_v29 = vmul.f32 %v3534_v35, %v1456_v31  ;;  %v1474_v55 = vmul.f32 %v3556_v13, %v1473_v62  ;;  %vm1440_vm11 = vmor %vm1438_vm10, %vm1439_vm7 }
 0x208   : > { %2247 = vst [vmem:[%s3572_s17 + $0x10] sm:$0xff] %v2164_v58   ;;  %v1699_v44 = vmul.f32 %v1451_v50, %v3342_v51  ;;  %v1437_v51 = vmul.f32 %v2388_v28, %v1436_v57  ;;  %v1322_v14 = vmul.f32 0.125, %v1273_v26  ;;  %2395 = vrsqrt.f32 %v3580_v53 }
 0x209   : > { %2246 = vst [vmem:[%s3572_s17 + $0x8] sm:$0xff] %v2159_v40   ;;  %v1461_v22 = vsel %vm3585_vm9, %v3534_v35, %v1457_v29  ;;  %v1475_v46 = vmul.f32 0.5, %v1474_v55  ;;  %v1320_v39 = vmul.f32 0.125, %v1269_v9  ;;  %2397 = vrsqrt.f32 %v3568_v59 }
 0x20a   : > { %v1735_v30 = vmul.f32 %v3506_v23, %v1699_v44  ;;  %v2394_v8 = vpop.eup %2393  ;;  %v1441_v4 = vsel %vm1440_vm11, %v2388_v28, %v1437_v51  ;;  %vm1478_vm12 = vweird.f32 %v3529_v47  ;;  %v1483_v17 = vmul.f32 %v3590_v45, %v3548_v43 }
 0x20b   : > { %v1698_v3 = vmul.f32 %v1441_v4, %v3336_v20  ;;  %v1476_v36 = vsub.f32 1.5, %v1475_v46  ;;  %vm1479_vm13 = vweird.f32 %v3556_v13  ;;  %v1463_v35 = vmul.f32 %v2394_v8, %v3551_v38  ;;  %v1277_v20 = vpop.xlane.xlu0 %1276  ;;  %v1279_v29 = vpop.xlane.xlu1 %1278 }
 0x20c   : > { %v1771_v24 = vadd.f32 %v3520_v48, %v1735_v30  ;;  %v1700_v32 = vmul.f32 %v1461_v22, %v3339_v41  ;;  %v1484_v58 = vmul.f32 %v3590_v45, %v1483_v17  ;;  %v3606_v19 = vadd.f32 1e-05, %v1322_v14  ;;  %vm1480_vm14 = vmor %vm1478_vm12, %vm1479_vm13  ;;  %v1275_v41 = vpop.xlane.xlu2 %1274 }
 0x20d   : > { %v1734_v28 = vmul.f32 %v3506_v23, %v1698_v3  ;;  %v1477_v9 = vmul.f32 %v3556_v13, %v1476_v36  ;;  %v1464_v40 = vmul.f32 %v2394_v8, %v1463_v35  ;;  %v3610_v50 = vadd.f32 1e-05, %v1320_v39 }
 0x20e   : > { %v1485_v31 = vmul.f32 0.5, %v1484_v58  ;;  %vm1488_vm15 = vweird.f32 %v3548_v43  ;;  %vm1489_vm2 = vweird.f32 %v3590_v45  ;;  %2399 = vrsqrt.f32 %v3606_v19  ;;  %v2396_v62 = vpop.eup %2395 }
 0x20f   : > { %v1770_v26 = vadd.f32 %v3520_v48, %v1734_v28  ;;  %v1481_v44 = vsel %vm1480_vm14, %v3556_v13, %v1477_v9  ;;  %v1465_v57 = vmul.f32 0.5, %v1464_v40  ;;  %2401 = vrsqrt.f32 %v3610_v50  ;;  %v3620_v47 = vpop.eup %2397  ;;  %vm1490_vm5 = vmor %vm1488_vm15, %vm1489_vm2 }
 0x210   : > { %v1736_v55 = vmul.f32 %v3506_v23, %v1700_v32  ;;  %v1702_v30 = vmul.f32 %v1481_v44, %v3360_v16  ;;  %v1486_v37 = vsub.f32 1.5, %v1485_v31  ;;  %v1503_v51 = vmul.f32 %v2396_v62, %v3580_v53 }
 0x211   : > { %v2169_v14 = vpack.c.bf16 %v1771_v24, %v1770_v26  ;;  %v1466_v22 = vsub.f32 1.5, %v1465_v57  ;;  %vm1469_vm3 = vweird.f32 %v2394_v8  ;;  %v1324_v46 = vmul.f32 0.125, %v1277_v20 }
 0x212   : > { %v1487_v13 = vmul.f32 %v3590_v45, %v1486_v37  ;;  %vm1468_vm4 = vweird.f32 %v3551_v38  ;;  %v1504_v39 = vmul.f32 %v2396_v62, %v1503_v51  ;;  %v1325_v4 = vmul.f32 0.125, %v1279_v29 }
 0x213   : > { %2248 = vst [vmem:[%s3572_s17 + $0x18] sm:$0xff] %v2169_v14   ;;  %v1738_v17 = vmul.f32 %v3506_v23, %v1702_v30  ;;  %v1467_v16 = vmul.f32 %v2394_v8, %v1466_v22  ;;  %vm1508_vm6 = vweird.f32 %v3580_v53  ;;  %v3634_v3 = vadd.f32 1e-05, %v1324_v46  ;;  %vm1470_vm1 = vmor %vm1468_vm4, %vm1469_vm3 }
 0x214   : > { %v3636_v36 = vpop.eup %2399  ;;  %v1772_v35 = vadd.f32 %v3520_v48, %v1736_v55  ;;  %v1491_v38 = vsel %vm1490_vm5, %v3590_v45, %v1487_v13  ;;  %v1505_v24 = vmul.f32 0.5, %v1504_v39  ;;  %v3641_v32 = vadd.f32 1e-05, %v1325_v4  ;;  %v1285_v13 = vpop.xlane.xlu1 %1284 }
 0x215   : > { %v2402_v58 = vpop.eup %2401  ;;  %v1703_v43 = vmul.f32 %v1491_v38, %v3357_v11  ;;  %v1471_v28 = vsel %vm1470_vm1, %v2394_v8, %v1467_v16  ;;  %v1513_v9 = vmul.f32 %v3636_v36, %v3606_v19  ;;  %v1323_v40 = vmul.f32 0.125, %v1275_v41  ;;  %v1283_v11 = vpop.xlane.xlu0 %1282 }
 0x216   : > { %v1701_v20 = vmul.f32 %v1471_v28, %v3354_v61  ;;  %v1506_v31 = vsub.f32 1.5, %v1505_v24  ;;  %vm1509_vm0 = vweird.f32 %v2396_v62  ;;  %v1493_v26 = vmul.f32 %v2402_v58, %v3610_v50  ;;  %v1281_v61 = vpop.xlane.xlu2 %1280 }
 0x217   : > { %v1774_v45 = vadd.f32 %v3520_v48, %v1738_v17  ;;  %v1739_v44 = vmul.f32 %v3506_v23, %v1703_v43  ;;  %v1514_v57 = vmul.f32 %v3636_v36, %v1513_v9  ;;  %2403 = vrsqrt.f32 %v3634_v3  ;;  %vm1510_vm7 = vmor %vm1508_vm6, %vm1509_vm0 }
 0x218   : > { %v1737_v8 = vmul.f32 %v3506_v23, %v1701_v20  ;;  %v1507_v29 = vmul.f32 %v2396_v62, %v1506_v31  ;;  %v1494_v55 = vmul.f32 %v2402_v58, %v1493_v26  ;;  %2405 = vrsqrt.f32 %v3641_v32 }
 0x219   : > { %v1775_v41 = vadd.f32 %v3520_v48, %v1739_v44  ;;  %v1515_v30 = vmul.f32 0.5, %v1514_v57  ;;  %vm1519_vm8 = vweird.f32 %v3636_v36  ;;  %v3658_v37 = vadd.f32 1e-05, %v1323_v40 }
 0x21a   : > { %v1773_v51 = vadd.f32 %v3520_v48, %v1737_v8  ;;  %v1511_v14 = vsel %vm1510_vm7, %v2396_v62, %v1507_v29  ;;  %v1495_v22 = vmul.f32 0.5, %v1494_v55  ;;  %v1327_v46 = vmul.f32 0.125, %v1283_v11 }
 0x21b   : > { %v2179_v39 = vpack.c.bf16 %v1775_v41, %v1774_v45  ;;  %v1705_v4 = vmul.f32 %v1511_v14, %v3378_v10  ;;  %v1516_v17 = vsub.f32 1.5, %v1515_v30  ;;  %2407 = vrsqrt.f32 %v3658_v37 }
 0x21c   : > { %v2174_v53 = vpack.c.bf16 %v1773_v51, %v1772_v35  ;;  %v1496_v16 = vsub.f32 1.5, %v1495_v22  ;;  %vm1499_vm9 = vweird.f32 %v2402_v58  ;;  %v3663_v38 = vadd.f32 1e-05, %v1327_v46  ;;  %v1291_v46 = vpop.xlane.xlu1 %1290 }
 0x21d   : > { %v3665_v24 = vpop.eup %2403  ;;  %2250 = vst [vmem:[%s3572_s17 + $0x28] sm:$0xff] %v2179_v39   ;;  %v1517_v62 = vmul.f32 %v3636_v36, %v1516_v17  ;;  %vm1518_vm10 = vweird.f32 %v3606_v19  ;;  %v1328_v43 = vmul.f32 0.125, %v1285_v13  ;;  %v1326_v28 = vmul.f32 0.125, %v1281_v61  ;;  %v1289_v29 = vpop.xlane.xlu0 %1288 }
 0x21e   : > { %v3670_v9 = vpop.eup %2405  ;;  %2249 = vst [vmem:[%s3572_s17 + $0x20] sm:$0xff] %v2174_v53   ;;  %vm3675_vm11 = vmor %vm1518_vm10, %vm1519_vm8  ;;  %v1497_v35 = vmul.f32 %v2402_v58, %v1496_v16  ;;  %vm1498_vm12 = vweird.f32 %v3610_v50  ;;  %v1533_v40 = vmul.f32 %v3665_v24, %v3634_v3  ;;  %2409 = vrsqrt.f32 %v3663_v38  ;;  %v1287_v41 = vpop.xlane.xlu2 %1286 }
 0x21f   : > { %v3685_v19 = vmul.f32 %v3620_v47, %v3568_v59  ;;  %v1741_v20 = vmul.f32 %v3506_v23, %v1705_v4  ;;  %v1521_v31 = vsel %vm3675_vm11, %v3636_v36, %v1517_v62  ;;  %vm1500_vm13 = vmor %vm1498_vm12, %vm1499_vm9  ;;  %v1543_v50 = vmul.f32 %v3670_v9, %v3641_v32 }
 0x220   : > { %v1501_v26 = vsel %vm1500_vm13, %v2402_v58, %v1497_v35  ;;  %v1534_v45 = vmul.f32 %v3665_v24, %v1533_v40  ;;  %vm1538_vm14 = vweird.f32 %v3634_v3  ;;  %vm1548_vm15 = vweird.f32 %v3641_v32 }
 0x221   : > { %v3697_v44 = vpop.eup %2407  ;;  %v1704_v57 = vmul.f32 %v1501_v26, %v3372_v21  ;;  %v1544_v11 = vmul.f32 %v3670_v9, %v1543_v50  ;;  %v3701_v8 = vadd.f32 1e-05, %v1328_v43  ;;  %v3703_v36 = vadd.f32 1e-05, %v1326_v28 }
 0x222   : > { %v1706_v55 = vmul.f32 %v1521_v31, %v3375_v1  ;;  %v1535_v58 = vmul.f32 0.5, %v1534_v45  ;;  %vm1539_vm2 = vweird.f32 %v3665_v24  ;;  %v1523_v61 = vmul.f32 %v3697_v44, %v3658_v37 }
 0x223   : > { %vm1528_vm3 = vweird.f32 %v3658_v37  ;;  %v1777_v21 = vadd.f32 %v3520_v48, %v1741_v20  ;;  %v1740_v30 = vmul.f32 %v3506_v23, %v1704_v57  ;;  %v1545_v51 = vmul.f32 0.5, %v1544_v11  ;;  %vm1540_vm6 = vmor %vm1538_vm14, %vm1539_vm2 }
 0x224   : > { %2411 = vrsqrt.f32 %v3701_v8  ;;  %v2410_v14 = vpop.eup %2409  ;;  %v1536_v22 = vsub.f32 1.5, %v1535_v58  ;;  %vm1549_vm4 = vweird.f32 %v3670_v9  ;;  %v1524_v1 = vmul.f32 %v3697_v44, %v1523_v61 }
 0x225   : > { %2413 = vrsqrt.f32 %v3703_v36  ;;  %v1776_v13 = vadd.f32 %v3520_v48, %v1740_v30  ;;  %v1546_v39 = vsub.f32 1.5, %v1545_v51  ;;  %v1563_v4 = vmul.f32 %v2410_v14, %v3663_v38  ;;  %vm1550_vm1 = vmor %vm1548_vm15, %vm1549_vm4  ;;  %v1295_v61 = vpop.xlane.xlu0 %1294 }
 0x226   : > { %vm1568_vm5 = vweird.f32 %v3663_v38  ;;  %v1742_v17 = vmul.f32 %v3506_v23, %v1706_v55  ;;  %v1537_v53 = vmul.f32 %v3665_v24, %v1536_v22  ;;  %v1525_v16 = vmul.f32 0.5, %v1524_v1  ;;  %v1293_v51 = vpop.xlane.xlu2 %1292 }
 0x227   : > { %v1330_v62 = vmul.f32 0.125, %v1289_v29  ;;  %v2184_v43 = vpack.c.bf16 %v1777_v21, %v1776_v13  ;;  %v1547_v28 = vmul.f32 %v3670_v9, %v1546_v39  ;;  %v1564_v10 = vmul.f32 %v2410_v14, %v1563_v4 }
 0x228   : > { %v1331_v35 = vmul.f32 0.125, %v1291_v46  ;;  %v1541_v40 = vsel %vm1540_vm6, %v3665_v24, %v1537_v53  ;;  %v1526_v20 = vsub.f32 1.5, %v1525_v16  ;;  %vm1529_vm0 = vweird.f32 %v3697_v44 }
 0x229   : > { %v3732_v31 = vadd.f32 1e-05, %v1330_v62  ;;  %2251 = vst [vmem:[%s3572_s17 + $0x30] sm:$0xff] %v2184_v43   ;;  %v1708_v3 = vmul.f32 %v1541_v40, %v3396_v5  ;;  %v1551_v26 = vsel %vm1550_vm1, %v3670_v9, %v1547_v28  ;;  %v1565_v45 = vmul.f32 0.5, %v1564_v10  ;;  %vm1530_vm8 = vmor %vm1528_vm3, %vm1529_vm0 }
 0x22a   : > { %v3734_v50 = vpop.eup %2411  ;;  %vm1569_vm7 = vweird.f32 %v2410_v14  ;;  %v1709_v57 = vmul.f32 %v1551_v26, %v3393_v52  ;;  %v1527_v32 = vmul.f32 %v3697_v44, %v1526_v20  ;;  %v3743_v29 = vadd.f32 1e-05, %v1331_v35 }
 0x22b   : > { %v2414_v24 = vpop.eup %2413  ;;  %v1573_v11 = vmul.f32 %v3734_v50, %v3701_v8  ;;  %v1744_v55 = vmul.f32 %v3506_v23, %v1708_v3  ;;  %v1566_v5 = vsub.f32 1.5, %v1565_v45  ;;  %v1329_v58 = vmul.f32 0.125, %v1287_v41  ;;  %vm1570_vm9 = vmor %vm1568_vm5, %vm1569_vm7 }
 0x22c   : > { %v1553_v9 = vmul.f32 %v2414_v24, %v3703_v36  ;;  %v1745_v21 = vmul.f32 %v3506_v23, %v1709_v57  ;;  %v1531_v52 = vsel %vm1530_vm8, %v3697_v44, %v1527_v32  ;;  %2415 = vrsqrt.f32 %v3732_v31 }
 0x22d   : > { %v1574_v30 = vmul.f32 %v3734_v50, %v1573_v11  ;;  %v1780_v22 = vadd.f32 %v3520_v48, %v1744_v55  ;;  %v1707_v1 = vmul.f32 %v1531_v52, %v3390_v49  ;;  %v1567_v37 = vmul.f32 %v2410_v14, %v1566_v5  ;;  %v1297_v49 = vpop.xlane.xlu1 %1296  ;;  %v1301_v55 = vpop.xlane.xlu0 %1300 }
 0x22e   : > { %v1554_v46 = vmul.f32 %v2414_v24, %v1553_v9  ;;  %v1384_v13 = vmul.f32 %v3620_v47, %v3685_v19  ;;  %v1781_v41 = vadd.f32 %v3520_v48, %v1745_v21  ;;  %2417 = vrsqrt.f32 %v3743_v29 }
 0x22f   : > { %v1743_v44 = vmul.f32 %v3506_v23, %v1707_v1  ;;  %v1571_v39 = vsel %vm1570_vm9, %v2410_v14, %v1567_v37  ;;  %v1575_v4 = vmul.f32 0.5, %v1574_v30  ;;  %v1778_v16 = vadd.f32 %v3520_v48, %v1742_v17 }
 0x230   : > { %v1555_v53 = vmul.f32 0.5, %v1554_v46  ;;  %v2194_v62 = vpack.c.bf16 %v1781_v41, %v1780_v22  ;;  %v1711_v19 = vmul.f32 %v1571_v39, %v3414_v60  ;;  %v3765_v43 = vadd.f32 1e-05, %v1329_v58  ;;  %v1245_v58 = vpop.xlane.xlu2 %1244 }
 0x231   : > { %v1779_v28 = vadd.f32 %v3520_v48, %v1743_v44  ;;  %vm1559_vm10 = vweird.f32 %v2414_v24  ;;  %v1333_v10 = vmul.f32 0.125, %v1295_v61  ;;  %vm1558_vm11 = vweird.f32 %v3703_v36 }
 0x232   : > { %v1556_v38 = vsub.f32 1.5, %v1555_v53  ;;  %v3768_v35 = vpop.eup %2415  ;;  %2253 = vst [vmem:[%s3572_s17 + $0x40] sm:$0xff] %v2194_v62   ;;  %2419 = vrsqrt.f32 %v3765_v43  ;;  %v1334_v14 = vmul.f32 0.125, %v1297_v49  ;;  %v1576_v40 = vsub.f32 1.5, %v1575_v4  ;;  %vm1560_vm13 = vmor %vm1558_vm11, %vm1559_vm10 }
 0x233   : > { %v2189_v17 = vpack.c.bf16 %v1779_v28, %v1778_v16  ;;  %v1593_v60 = vmul.f32 %v3768_v35, %v3732_v31  ;;  %v3777_v26 = vmul.f32 0.5, %v1384_v13  ;;  %v1747_v45 = vmul.f32 %v3506_v23, %v1711_v19 }
 0x234   : > { %v1557_v20 = vmul.f32 %v2414_v24, %v1556_v38  ;;  %v3775_v3 = vpop.eup %2417  ;;  %vm1578_vm12 = vweird.f32 %v3701_v8  ;;  %v3782_v36 = vadd.f32 1e-05, %v1333_v10  ;;  %vm1579_vm14 = vweird.f32 %v3734_v50 }
 0x235   : > { %2252 = vst [vmem:[%s3572_s17 + $0x38] sm:$0xff] %v2189_v17   ;;  %v1594_v32 = vmul.f32 %v3768_v35, %v1593_v60  ;;  %v1603_v11 = vmul.f32 %v3775_v3, %v3743_v29  ;;  %vm1598_vm15 = vweird.f32 %v3732_v31  ;;  %v3792_v9 = vadd.f32 1e-05, %v1334_v14  ;;  %v1303_v41 = vpop.xlane.xlu1 %1302  ;;  %vm3813_vm5 = vmor %vm1578_vm12, %vm1579_vm14 }
 0x236   : > { %v1561_v57 = vsel %vm1560_vm13, %v2414_v24, %v1557_v20  ;;  %2421 = vrsqrt.f32 %v3782_v36  ;;  %v1577_v61 = vmul.f32 %v3734_v50, %v1576_v40  ;;  %vm1608_vm2 = vweird.f32 %v3743_v29 }
 0x237   : > { %v1710_v5 = vmul.f32 %v1561_v57, %v3408_v42  ;;  %v1595_v21 = vmul.f32 0.5, %v1594_v32  ;;  %v1604_v24 = vmul.f32 %v3775_v3, %v1603_v11  ;;  %v1783_v30 = vadd.f32 %v3520_v48, %v1747_v45  ;;  %v1307_v57 = vpop.xlane.xlu0 %1306 }
 0x238   : > { %v3797_v52 = vpop.eup %2419  ;;  %v1332_v22 = vmul.f32 0.125, %v1293_v51  ;;  %v1336_v1 = vmul.f32 0.125, %v1301_v55  ;;  %vm1599_vm3 = vweird.f32 %v3768_v35  ;;  %vm1609_vm4 = vweird.f32 %v3775_v3  ;;  %v1299_v32 = vpop.xlane.xlu2 %1298 }
 0x239   : > { %v1746_v42 = vmul.f32 %v3506_v23, %v1710_v5  ;;  %v1596_v37 = vsub.f32 1.5, %v1595_v21  ;;  %v1605_v46 = vmul.f32 0.5, %v1604_v24  ;;  %v1583_v13 = vmul.f32 %v3797_v52, %v3765_v43  ;;  %vm1600_vm6 = vmor %vm1598_vm15, %vm1599_vm3 }
 0x23a   : > { %2423 = vrsqrt.f32 %v3792_v9  ;;  %v3807_v39 = vadd.f32 1e-05, %v1332_v22  ;;  %v3819_v16 = vadd.f32 1e-05, %v1336_v1  ;;  %v1581_v19 = vsel %vm3813_vm5, %v3734_v50, %v1577_v61  ;;  %vm1610_vm0 = vmor %vm1608_vm2, %vm1609_vm4 }
 0x23b   : > { %v1782_v44 = vadd.f32 %v3520_v48, %v1746_v42  ;;  %v1597_v4 = vmul.f32 %v3768_v35, %v1596_v37  ;;  %v1606_v53 = vsub.f32 1.5, %v1605_v46  ;;  %v1584_v49 = vmul.f32 %v3797_v52, %v1583_v13 }
 0x23c   : > { %v3821_v62 = vpop.eup %2421  ;;  %2425 = vrsqrt.f32 %v3807_v39  ;;  %v1337_v8 = vmul.f32 0.125, %v1303_v41  ;;  %v1386_v40 = vsub.f32 1.5, %v3777_v26  ;;  %vm1389_vm1 = vweird.f32 %v3620_v47 }
 0x23d   : > { %v2199_v28 = vpack.c.bf16 %v1783_v30, %v1782_v44  ;;  %v1601_v38 = vsel %vm1600_vm6, %v3768_v35, %v1597_v4  ;;  %v1607_v10 = vmul.f32 %v3775_v3, %v1606_v53  ;;  %v1585_v14 = vmul.f32 0.5, %v1584_v49 }
 0x23e   : > { %v1623_v17 = vmul.f32 %v3821_v62, %v3782_v36  ;;  %v1714_v50 = vmul.f32 %v1601_v38, %v3432_v7  ;;  %vm1589_vm7 = vweird.f32 %v3797_v52  ;;  %2427 = vrsqrt.f32 %v3819_v16 }
 0x23f   : > { %2254 = vst [vmem:[%s3572_s17 + $0x48] sm:$0xff] %v2199_v28   ;;  %v1611_v31 = vsel %vm1610_vm0, %v3775_v3, %v1607_v10  ;;  %v1586_v35 = vsub.f32 1.5, %v1585_v14  ;;  %vm1388_vm8 = vweird.f32 %v3568_v59  ;;  %v1712_v7 = vmul.f32 %v1581_v19, %v3411_v0 }
 0x240   : > { %v1624_v20 = vmul.f32 %v3821_v62, %v1623_v17  ;;  %v3847_v60 = vpop.eup %2423  ;;  %v1750_v26 = vmul.f32 %v3506_v23, %v1714_v50  ;;  %v1715_v29 = vmul.f32 %v1611_v31, %v3429_v63  ;;  %v3853_v45 = vadd.f32 1e-05, %v1337_v8  ;;  %vm3893_vm14 = vmor %vm1388_vm8, %vm1389_vm1  ;;  %v1305_v50 = vpop.xlane.xlu2 %1304 }
 0x241   : > { %v1587_v3 = vmul.f32 %v3797_v52, %v1586_v35  ;;  %vm1588_vm9 = vweird.f32 %v3765_v43  ;;  %v1308_v55 = vmul.f32 0.125, %v1245_v58  ;;  %vm1629_vm11 = vweird.f32 %v3821_v62 }
 0x242   : > { %v1625_v11 = vmul.f32 0.5, %v1624_v20  ;;  %v2426_v5 = vpop.eup %2425  ;;  %v1786_v61 = vadd.f32 %v3520_v48, %v1750_v26  ;;  %v1751_v21 = vmul.f32 %v3506_v23, %v1715_v29  ;;  %vm1590_vm10 = vmor %vm1588_vm9, %vm1589_vm7  ;;  %2429 = vrsqrt.f32 %v3853_v45 }
 0x243   : > { %v1591_v0 = vsel %vm1590_vm10, %v3797_v52, %v1587_v3  ;;  %v1613_v24 = vmul.f32 %v2426_v5, %v3807_v39  ;;  %v1339_v43 = vmul.f32 0.125, %v1307_v57  ;;  %v3866_v58 = vmul.f32 %v3620_v47, %v1386_v40 }
 0x244   : > { %v1626_v63 = vsub.f32 1.5, %v1625_v11  ;;  %v1748_v30 = vmul.f32 %v3506_v23, %v1712_v7  ;;  %v1787_v42 = vadd.f32 %v3520_v48, %v1751_v21  ;;  %v1713_v22 = vmul.f32 %v1591_v0, %v3426_v27  ;;  %v2428_v1 = vpop.eup %2427 }
 0x245   : > { %vm1628_vm12 = vweird.f32 %v3782_v36  ;;  %v1614_v52 = vmul.f32 %v2426_v5, %v1613_v24  ;;  %v3873_v46 = vadd.f32 1e-05, %v1308_v55  ;;  %v1633_v44 = vmul.f32 %v3847_v60, %v3792_v9 }
 0x246   : > { %v1627_v37 = vmul.f32 %v3821_v62, %v1626_v63  ;;  %v2209_v13 = vpack.c.bf16 %v1787_v42, %v1786_v61  ;;  %v1749_v41 = vmul.f32 %v3506_v23, %v1713_v22  ;;  %vm1630_vm13 = vmor %vm1628_vm12, %vm1629_vm11  ;;  %v1653_v27 = vmul.f32 %v2428_v1, %v3819_v16 }
 0x247   : > { %v1615_v4 = vmul.f32 0.5, %v1614_v52  ;;  %2431 = vrsqrt.f32 %v3873_v46  ;;  %v3883_v36 = vadd.f32 1e-05, %v1339_v43  ;;  %v1784_v49 = vadd.f32 %v3520_v48, %v1748_v30 }
 0x248   : > { %v1631_v51 = vsel %vm1630_vm13, %v3821_v62, %v1627_v37  ;;  %v2430_v53 = vpop.eup %2429  ;;  %2256 = vst [vmem:[%s3572_s17 + $0x58] sm:$0xff] %v2209_v13   ;;  %v1785_v19 = vadd.f32 %v3520_v48, %v1749_v41  ;;  %v1654_v8 = vmul.f32 %v2428_v1, %v1653_v27  ;;  %vm1619_vm15 = vweird.f32 %v2426_v5 }
 0x249   : > { %v1717_v28 = vmul.f32 %v1631_v51, %v3450_v56  ;;  %v1616_v38 = vsub.f32 1.5, %v1615_v4  ;;  %v1663_v10 = vmul.f32 %v2430_v53, %v3853_v45  ;;  %v1391_v14 = vsel %vm3893_vm14, %v3620_v47, %v3866_v58 }
 0x24a   : > { %v2204_v17 = vpack.c.bf16 %v1785_v19, %v1784_v49  ;;  %v1634_v56 = vmul.f32 %v3847_v60, %v1633_v44  ;;  %v1655_v40 = vmul.f32 0.5, %v1654_v8  ;;  %vm1618_vm2 = vweird.f32 %v3807_v39 }
 0x24b   : > { %v1617_v31 = vmul.f32 %v2426_v5, %v1616_v38  ;;  %v1664_v59 = vmul.f32 %v2430_v53, %v1663_v10  ;;  %2433 = vrsqrt.f32 %v3883_v36  ;;  %v1753_v35 = vmul.f32 %v3506_v23, %v1717_v28  ;;  %vm1620_vm3 = vmor %vm1618_vm2, %vm1619_vm15 }
 0x24c   : > { %2255 = vst [vmem:[%s3572_s17 + $0x50] sm:$0xff] %v2204_v17   ;;  %v1656_v20 = vsub.f32 1.5, %v1655_v40  ;;  %vm1659_vm4 = vweird.f32 %v2428_v1  ;;  %v1335_v7 = vmul.f32 0.125, %v1299_v32  ;;  %vm1658_vm5 = vweird.f32 %v3819_v16 }
 0x24d   : > { %v2432_v26 = vpop.eup %2431  ;;  %v1621_v47 = vsel %vm1620_vm3, %v2426_v5, %v1617_v31  ;;  %v1665_v29 = vmul.f32 0.5, %v1664_v59  ;;  %v1338_v57 = vmul.f32 0.125, %v1305_v50  ;;  %v1635_v3 = vmul.f32 0.5, %v1634_v56  ;;  %vm1660_vm6 = vmor %vm1658_vm5, %vm1659_vm4 }
 0x24e   : > { %v1716_v11 = vmul.f32 %v1621_v47, %v3444_v2  ;;  %v1657_v39 = vmul.f32 %v2428_v1, %v1656_v20  ;;  %v1373_v55 = vmul.f32 %v2432_v26, %v3873_v46  ;;  %vm1669_vm1 = vweird.f32 %v2430_v53 }
 0x24f   : > { %v1666_v61 = vsub.f32 1.5, %v1665_v29  ;;  %v3910_v21 = vadd.f32 1e-05, %v1335_v7  ;;  %v3912_v0 = vadd.f32 1e-05, %v1338_v57  ;;  %v1789_v32 = vadd.f32 %v3520_v48, %v1753_v35 }
 0x250   : > { %v1752_v5 = vmul.f32 %v3506_v23, %v1716_v11  ;;  %v1661_v16 = vsel %vm1660_vm6, %v2428_v1, %v1657_v39  ;;  %v1374_v63 = vmul.f32 %v2432_v26, %v1373_v55  ;;  %vm1668_vm0 = vweird.f32 %v3853_v45 }
 0x251   : > { %v3916_v24 = vpop.eup %2433  ;;  %v1720_v2 = vmul.f32 %v1661_v16, %v3468_v18  ;;  %v1667_v43 = vmul.f32 %v2430_v53, %v1666_v61  ;;  %2435 = vrsqrt.f32 %v3910_v21  ;;  %v1636_v58 = vsub.f32 1.5, %v1635_v3  ;;  %vm1670_vm7 = vmor %vm1668_vm0, %vm1669_vm1 }
 0x252   : > { %v1788_v30 = vadd.f32 %v3520_v48, %v1752_v5  ;;  %v1375_v42 = vmul.f32 0.5, %v1374_v63  ;;  %v1683_v22 = vmul.f32 %v3916_v24, %v3883_v36  ;;  %vm1379_vm8 = vweird.f32 %v2432_v26 }
 0x253   : > { %v1756_v1 = vmul.f32 %v3506_v23, %v1720_v2  ;;  %v1671_v37 = vsel %vm1670_vm7, %v2430_v53, %v1667_v43  ;;  %2437 = vrsqrt.f32 %v3912_v0  ;;  %v1693_v41 = vmul.f32 %v1391_v14, %v3304_v15 }
 0x254   : > { %v2214_v18 = vpack.c.bf16 %v1789_v32, %v1788_v30  ;;  %v1721_v45 = vmul.f32 %v1671_v37, %v3465_v33  ;;  %v1376_v52 = vsub.f32 1.5, %v1375_v42  ;;  %v1684_v13 = vmul.f32 %v3916_v24, %v1683_v22 }
 0x255   : > { %vm1378_vm9 = vweird.f32 %v3873_v46  ;;  %v1792_v44 = vadd.f32 %v3520_v48, %v1756_v1  ;;  %v1637_v49 = vmul.f32 %v3847_v60, %v1636_v58  ;;  %vm1639_vm10 = vweird.f32 %v3847_v60 }
 0x256   : > { %2257 = vst [vmem:[%s3572_s17 + $0x60] sm:$0xff] %v2214_v18   ;;  %v1757_v27 = vmul.f32 %v3506_v23, %v1721_v45  ;;  %v1377_v51 = vmul.f32 %v2432_v26, %v1376_v52  ;;  %v1685_v4 = vmul.f32 0.5, %v1684_v13  ;;  %vm1380_vm11 = vmor %vm1378_vm9, %vm1379_vm8  ;;  %v1729_v8 = vmul.f32 %v3506_v23, %v1693_v41 }
 0x257   : > { %v2436_v53 = vpop.eup %2435  ;;  %vm1638_vm12 = vweird.f32 %v3792_v9  ;;  %vm1689_vm13 = vweird.f32 %v3916_v24  ;;  %vm1688_vm15 = vweird.f32 %v3883_v36  ;;  %vm1648_vm4 = vweird.f32 %v3910_v21 }
 0x258   : > { %v1793_v33 = vadd.f32 %v3520_v48, %v1757_v27  ;;  %v1381_v15 = vsel %vm1380_vm11, %v2432_v26, %v1377_v51  ;;  %v1686_v19 = vsub.f32 1.5, %v1685_v4  ;;  %v1643_v46 = vmul.f32 %v2436_v53, %v3910_v21  ;;  %vm1640_vm14 = vmor %vm1638_vm12, %vm1639_vm10 }
 0x259   : > { %v2438_v28 = vpop.eup %2437  ;;  %v1692_v62 = vmul.f32 %v1381_v15, %v3462_v54  ;;  %v1641_v40 = vsel %vm1640_vm14, %v3847_v60, %v1637_v49  ;;  %v1765_v50 = vadd.f32 %v3520_v48, %v1729_v8  ;;  %vm1690_vm2 = vmor %vm1688_vm15, %vm1689_vm13  ;;  %vm1649_vm3 = vweird.f32 %v2436_v53 }
 0x25a   : > { %v2224_v38 = vpack.c.bf16 %v1793_v33, %v1792_v44  ;;  %v1687_v10 = vmul.f32 %v3916_v24, %v1686_v19  ;;  %v1644_v14 = vmul.f32 %v2436_v53, %v1643_v46  ;;  %v1673_v17 = vmul.f32 %v2438_v28, %v3912_v0  ;;  %vm1650_vm6 = vmor %vm1648_vm4, %vm1649_vm3 }
 0x25b   : > { %v1728_v56 = vmul.f32 %v3506_v23, %v1692_v62  ;;  %v1718_v23 = vmul.f32 %v1641_v40, %v3447_v12  ;;  %vm1679_vm5 = vweird.f32 %v2438_v28  ;;  %vm1678_vm1 = vweird.f32 %v3912_v0  ;;  %v2439_v12 = vld [vmem:[%s4013_s5] ss:$0 sm:$0xff] }
 0x25c   : > { %2259 = vst [vmem:[%s3572_s17 + $0x70] sm:$0xff] %v2224_v38   ;;  %v1645_v54 = vmul.f32 0.5, %v1644_v14  ;;  %v1674_v9 = vmul.f32 %v2438_v28, %v1673_v17  ;;  %v1691_v59 = vsel %vm1690_vm2, %v3916_v24, %v1687_v10  ;;  %vm1680_vm0 = vmor %vm1678_vm1, %vm1679_vm5 }
 0x25d   : > { %v1764_v31 = vadd.f32 %v3520_v48, %v1728_v56  ;;  %v1723_v26 = vmul.f32 %v1691_v59, %v3482_v6  ;;  %v1754_v57 = vmul.f32 %v2439_v12, %v1718_v23 }
 0x25e   : > { %v1646_v35 = vsub.f32 1.5, %v1645_v54  ;;  %v1675_v20 = vmul.f32 0.5, %v1674_v9 }
 0x25f   : > { %v2154_v60 = vpack.c.bf16 %v1765_v50, %v1764_v31  ;;  %v1759_v6 = vmul.f32 %v2439_v12, %v1723_v26  ;;  %v1790_v61 = vadd.f32 %v3520_v48, %v1754_v57 }
 0x260   : > { %v1647_v7 = vmul.f32 %v2436_v53, %v1646_v35  ;;  %v1676_v36 = vsub.f32 1.5, %v1675_v20 }
 0x261   : > { %2155 = vst [vmem:[%s3572_s17] sm:$0xff] %v2154_v60  }
 0x262   : > { %v1651_v47 = vsel %vm1650_vm6, %v2436_v53, %v1647_v7  ;;  %v1677_v29 = vmul.f32 %v2438_v28, %v1676_v36 }
 0x263   : > { %v1719_v3 = vmul.f32 %v1651_v47, %v3479_v34  ;;  %v1795_v34 = vadd.f32 %v3520_v48, %v1759_v6 }
 0x264   : > { %v1681_v11 = vsel %vm1680_vm0, %v2438_v28, %v1677_v29 }
 0x265   : > { %v1755_v39 = vmul.f32 %v2439_v12, %v1719_v3  ;;  %v1722_v55 = vmul.f32 %v1681_v11, %v3490_v25 }
 0x267   : > { %v1791_v21 = vadd.f32 %v3520_v48, %v1755_v39  ;;  %v1758_v0 = vmul.f32 %v2439_v12, %v1722_v55 }
 0x269   : > { %v2219_v32 = vpack.c.bf16 %v1791_v21, %v1790_v61  ;;  %v1794_v5 = vadd.f32 %v3520_v48, %v1758_v0 }
 0x26b   : > { %2258 = vst [vmem:[%s3572_s17 + $0x68] sm:$0xff] %v2219_v32   ;;  %v2229_v16 = vpack.c.bf16 %v1795_v34, %v1794_v5 }
 0x26d   : > { %2260 = vst [vmem:[%s3572_s17 + $0x78] sm:$0xff] %v2229_v16  }
 0x26e   : > { %2557 = shalt.err (!%p2554_p0)
}
 0x26f   : > { %s2626_s10 = smov 64   ;;  %s2627_s8 = smov 4  }
 0x270   : > { %2296 = dma.vmem_to_hbm [thread:$0]  (%p2742_p5), %s1877_s14, 2048, %s1879_s19, %s1861_s23, %s2626_s10, %s2626_s10, %s2627_s8  }
 0x271 PF: > { %s4076_s13 = sld [smem:[#allocation13_spill]]  ;;  %p2310_p3 = pnand %p2005_p11, %p2713_p6 }
 0x273   : > { %p2311_p7 = pneg %p2310_p3 }
 0x277   : > { %s1893_s18 = sand.u32 1, %s4076_s13  }
 0x278   : > { %s1894_s12 = scalar_lea.sflag [#allocation4], %s1893_s18 }
 0x279   : > { %2595 = dma.done.wait (%p2311_p7), %s1894_s12, 2048  }
 0x27a   : > { %2597 = vsyncadd (%p2311_p7), %s1894_s12, 4294965248  ;;  %s26_s29 = sadd.s32 1, %s2620_s29   ;;  %s4078_s2 = sld [smem:[#allocation14_spill]] }
 0x27b   : > { %p23_p9 = scmp.ge.s32.totalorder %s26_s29, 4   ;;  %s4079_s26 = sld [smem:[#allocation18_spill]] }
 0x27c   : > { %s4080_s21 = sld [smem:[#allocation16_spill]]  ;;  %s4081_s24 = smov %s2604_s25 }
 0x27d   : > { %s4083_s27 = smov %s2616_s28 }
 0x27e   :  { %25 = sbr.rel (!%p23_p9) target bundleno = 10 (0xa), region = 110 }
 0x280   : > { %s4082_s25 = smov %s4078_s2 }
 0x282   : > { %s4084_s28 = smov %s4080_s21 }
 0x283   :  { %1900 = vsyncpa [#allocation3], 1 }
 0x284   :  { %1902 = vsyncpa [#allocation3 + $0x1], 1 }
 0x285   :  { %1903 = vsyncpa [#allocation6], 1 }
 0x286   :  { %1905 = vsyncpa [#allocation6 + $0x1], 1 }
 0x287   :  { %1906 = vsyncpa [#allocation4], 1 }
 0x288   :  { %1908 = vsyncpa [#allocation4 + $0x1], 1 }

</bundles_post_ra>
